<compile_context>
chip_gen: v7x
topology: tpu7x:2x2x1
jax: 0.10.0
libtpu: 0.0.40
codegen_flags: <defaults>
</compile_context>

<pallas_src>
import numpy as np
import jax
import jax.numpy as jnp
from jax.experimental import pallas as pl
from jax.experimental.pallas import tpu as pltpu


def _round_up8(n):
    return -(-n // 8) * 8


# ----------------------------------------------------------------------------
# Kernel factory: runs the whole MLP on one lane-tile of points.
# ----------------------------------------------------------------------------
def make_mlp_kernel(layer_specs, d_in, d_out, tile_n, chunk_n):
    n_layers = len(layer_specs)
    n_chunks = tile_n // chunk_n

    def kernel(x_ref, w_ref, b_ref, o_ref):
        # x_ref: (d_in, tile_n) f32    w_ref: (R, C) bf16 packed weights
        # b_ref: (R, 1) f32 packed biases    o_ref: (d_out, tile_n)
        #
        # Load the (tiny) packed parameters once per grid step; they stay in
        # vregs across the chunk loop (~3 vregs total).  Static ref slices at
        # sublane-aligned offsets -> plain (possibly lane-masked) vector loads.
        layer_wb = []
        for s in layer_specs:
            off, rows, in_dim = s["row_off"], s["rows"], s["in_dim"]
            w = w_ref[off:off + rows, 0:in_dim]          # bf16 (rows, in_dim)
            b = b_ref[off:off + rows, :]                 # f32  (rows, 1)
            if s["skip"]:
                split = in_dim - d_in                    # cols multiplying h
                layer_wb.append((w[:, :split], w[:, split:], b))
            else:
                layer_wb.append((w, None, b))

        # Straight-line chunk loop (the fully-unrolled equivalent of
        # lax.fori_loop(..., unroll=True), with static 128-aligned offsets).
        for c in range(n_chunks):
            c0 = c * chunk_n
            x_bf = x_ref[:, c0:c0 + chunk_n].astype(jnp.bfloat16)
            x_init = x_bf
            h = x_bf
            for li, s in enumerate(layer_specs):
                w_hid, w_skip, b = layer_wb[li]
                if s["skip"]:
                    # cat([h, x_init])/sqrt(2) as a split matmul (scale folded
                    # into the weights); single expression -> one accumulator.
                    acc = (jnp.dot(w_hid, h,
                                   preferred_element_type=jnp.float32)
                           + jnp.dot(w_skip, x_init,
                                     preferred_element_type=jnp.float32)
                           + b)
                else:
                    acc = jnp.dot(w_hid, h,
                                  preferred_element_type=jnp.float32) + b
                if li < n_layers - 1:                    # ReLU except last
                    h = jnp.maximum(acc, 0.0).astype(jnp.bfloat16)
                else:
                    h = acc                              # f32
            # Last layer is row-padded to 8 in the pack; keep only d_out rows.
            o_ref[:, c0:c0 + chunk_n] = h[:d_out, :].astype(o_ref.dtype)

    return kernel


# ----------------------------------------------------------------------------
# Wrapper (feature-major): x_fm (d_in, N) -> (d_out, N).  No HBM transposes.
# ----------------------------------------------------------------------------
def implicit_net_pallas(x_fm, w_pack, b_pack, layer_specs, d_out, *,
                        tile_n=2048, chunk_n=512, out_dtype=jnp.float32):
    d_in, N = x_fm.shape
    assert tile_n % chunk_n == 0 and chunk_n % 128 == 0

    # Remainder handling: zero-pad the lane axis up to a tile multiple.
    pad = (-N) % tile_n
    if pad:
        x_fm = jnp.pad(x_fm, ((0, 0), (0, pad)))
    n_pad = N + pad

    kernel = make_mlp_kernel(layer_specs, d_in, d_out, tile_n, chunk_n)

    in_specs = [
        pl.BlockSpec((d_in, tile_n), lambda i: (0, i)),
        # Full-array blocks with constant index_map -> parameters stay
        # VMEM-resident across grid steps (no re-DMA).
        pl.BlockSpec(w_pack.shape, lambda i: (0, 0)),
        pl.BlockSpec(b_pack.shape, lambda i: (0, 0)),
    ]
    out_spec = pl.BlockSpec((d_out, tile_n), lambda i: (0, i))

    out = pl.pallas_call(
        kernel,
        out_shape=jax.ShapeDtypeStruct((d_out, n_pad), out_dtype),
        grid_spec=pltpu.PrefetchScalarGridSpec(
            num_scalar_prefetch=0,
            grid=(n_pad // tile_n,),
            in_specs=in_specs,
            out_specs=out_spec,
        ),
        compiler_params=pltpu.CompilerParams(
            dimension_semantics=("parallel",)),
    )(x_fm, w_pack, b_pack)

    if pad:
        out = out[:, :N]
    return out


def implicit_net_pallas_points(x, w_pack, b_pack, layer_specs, d_out, **kw):
    """Compatibility entry point for (N, d_in) inputs (PyTorch layout).
    Pays two extra HBM round-trip transposes; prefer the feature-major API."""
    return implicit_net_pallas(x.T, w_pack, b_pack, layer_specs, d_out, **kw).T


# ----------------------------------------------------------------------------
# Parameter construction (deterministic, geometric-init-style scales), packed
# into one bf16 weight buffer + one f32 bias buffer.
#   - weights stored (out_dim, in_dim) (torch.nn.Linear.weight layout)
#   - skip-layer 1/sqrt(2) folded into the weight
#   - layer l occupies rows [row_off, row_off + rows) (rows = out_dim rounded
#     up to a sublane multiple), columns [0, in_dim).
# ----------------------------------------------------------------------------
def build_params(key, d_in, hidden_dims, skip_in, d_out,
                 radius_init=0.3, output_init_gain=2.0, sdf_scale=1.0,
                 num_position_inputs=3, param_dtype=jnp.bfloat16):
    dims = [d_in] + list(hidden_dims) + [d_out]
    num_layers = len(dims)
    inv_sqrt2 = np.float32(1.0 / np.sqrt(2.0))

    weights, biases, layer_specs = [], [], []
    for layer in range(num_layers - 1):
        if layer + 1 in skip_in:
            out_dim = dims[layer + 1] - d_in
        else:
            out_dim = dims[layer + 1]
        in_dim = dims[layer]

        key, kw, kw2 = jax.random.split(key, 3)
        if layer == num_layers - 2:
            # output layer: row 0 -> sphere-SDF style, rest -> gain*normal
            w = output_init_gain * jax.random.normal(
                kw, (out_dim, in_dim), jnp.float32)
            w = w.at[0, :].set(
                -np.sqrt(np.pi) / np.sqrt(in_dim) * sdf_scale
                + 1e-5 * jax.random.normal(kw2, (in_dim,), jnp.float32))
            b = jnp.zeros((out_dim, 1), jnp.float32).at[0, 0].set(radius_init)
        else:
            w = jax.random.normal(kw, (out_dim, in_dim), jnp.float32) \
                * np.float32(np.sqrt(2.0) / np.sqrt(out_dim))
            b = jnp.zeros((out_dim, 1), jnp.float32)
        # geometric_init: zero the non-position input columns on layer 0 /
        # skip layers (mirrors the module's init).
        if d_in > num_position_inputs and (layer == 0 or layer in skip_in):
            w = w.at[:, -(d_in - num_position_inputs):].set(0.0)

        is_skip = layer in skip_in
        if is_skip:
            w = w * inv_sqrt2   # fold the cat(...)/sqrt(2) scale into W
        weights.append(w)
        biases.append(b)
        layer_specs.append({"skip": is_skip, "out_dim": out_dim,
                            "in_dim": in_dim})

    # Pack into single buffers (3 pallas inputs total).
    R = 0
    for s in layer_specs:
        s["row_off"] = R
        s["rows"] = _round_up8(s["out_dim"])
        R += s["rows"]
    C = max(s["in_dim"] for s in layer_specs)

    w_pack = jnp.zeros((R, C), jnp.float32)
    b_pack = jnp.zeros((R, 1), jnp.float32)
    for s, w, b in zip(layer_specs, weights, biases):
        o, od, idim = s["row_off"], s["out_dim"], s["in_dim"]
        w_pack = w_pack.at[o:o + od, :idim].set(w)
        b_pack = b_pack.at[o:o + od, :].set(b)
    return w_pack.astype(param_dtype), b_pack, layer_specs


# ----------------------------------------------------------------------------
# Pure-JAX reference: same bf16-operand / f32-accumulation policy, written in
# the concatenation form of the PyTorch forward (the 1/sqrt(2) is already
# folded into the packed skip weights).  Not bit-identical to a pure-f32
# PyTorch forward (bf16 weights + split-K accumulation order) — checked at
# 1e-3 tolerance.
# ----------------------------------------------------------------------------
def implicit_net_ref(x_fm, w_pack, b_pack, layer_specs):
    x = x_fm.astype(jnp.bfloat16)          # (d_in, N)
    x_init = x
    h = x
    n_layers = len(layer_specs)
    for li, s in enumerate(layer_specs):
        off, od, idim = s["row_off"], s["out_dim"], s["in_dim"]
        w = w_pack[off:off + od, :idim]
        b = b_pack[off:off + od, :]
        h_in = jnp.concatenate([h, x_init], axis=0) if s["skip"] else h
        acc = jnp.dot(w, h_in, preferred_element_type=jnp.float32) + b
        if li < n_layers - 1:
            h = jax.nn.relu(acc).astype(jnp.bfloat16)
        else:
            h = acc
    return h                                # (d_out, N) f32


if __name__ == "__main__":
    # Config consistent with the module:
    #   d_in=8, dims=[32, 32, 32], skip_in=(2,), d_out=4, beta=0 (ReLU)
    d_in, hidden_dims, skip_in, d_out = 8, [32, 32, 32], (2,), 4
    # 4 grid steps -> >= 2 steps per v7x TensorCore (pipeline stays primed),
    # tile_n=2048 amortizes the per-step overhead, 512-lane chunks inside.
    N, tile_n, chunk_n = 8192, 2048, 512

    key = jax.random.PRNGKey(0)
    kx, kp = jax.random.split(key)
    # Feature-major input (d_in, N): the surrounding program keeps activations
    # feature-major, so there is no wrapper-side HBM transpose.
    x_fm = jax.random.normal(kx, (d_in, N), jnp.float32)

    w_pack, b_pack, layer_specs = build_params(
        kp, d_in, hidden_dims, skip_in, d_out)

    out = implicit_net_pallas(x_fm, w_pack, b_pack, layer_specs, d_out,
                              tile_n=tile_n, chunk_n=chunk_n)
    out = jax.block_until_ready(out)

    ref = implicit_net_ref(x_fm, w_pack, b_pack, layer_specs)
    np.testing.assert_allclose(np.asarray(out), np.asarray(ref),
                               rtol=1e-3, atol=1e-3)
    print("KERNEL_OK")
</pallas_src>

<mosaic_0001>
module attributes {stable_mosaic.version = 11 : i64} {
  func.func @kernel(%arg0: i32, %arg1: memref<8x2048xf32, #tpu.memory_space<vmem>>, %arg2: memref<96x32xbf16, #tpu.memory_space<vmem>>, %arg3: memref<96x1xf32, #tpu.memory_space<vmem>>, %arg4: memref<4x2048xf32, #tpu.memory_space<vmem>>) attributes {dimension_semantics = [#tpu.dimension_semantics<parallel>], iteration_bounds = array<i64: 4>, scalar_prefetch = 0 : i64, scratch_operands = 0 : i64, tpu.core_type = #tpu.core_type<tc>, window_params = [{transform_indices = @transform_0, window_bounds = array<i64: 8, 2048>}, {pipeline_mode = #tpu.pipeline_mode<synchronous>, transform_indices = @transform_1, window_bounds = array<i64: 96, 32>}, {pipeline_mode = #tpu.pipeline_mode<synchronous>, transform_indices = @transform_2, window_bounds = array<i64: 96, 1>}, {transform_indices = @transform_3, window_bounds = array<i64: 4, 2048>}]} {
    %c0 = arith.constant 0 : index
    %c0_0 = arith.constant 0 : index
    %0 = vector.load %arg2[%c0, %c0_0] : memref<96x32xbf16, #tpu.memory_space<vmem>>, vector<32x8xbf16>
    %c0_1 = arith.constant 0 : index
    %c0_2 = arith.constant 0 : index
    %1 = vector.load %arg3[%c0_1, %c0_2] : memref<96x1xf32, #tpu.memory_space<vmem>>, vector<32x1xf32>
    %c32 = arith.constant 32 : index
    %c0_3 = arith.constant 0 : index
    %2 = vector.load %arg2[%c32, %c0_3] : memref<96x32xbf16, #tpu.memory_space<vmem>>, vector<24x32xbf16>
    %c32_4 = arith.constant 32 : index
    %c0_5 = arith.constant 0 : index
    %3 = vector.load %arg3[%c32_4, %c0_5] : memref<96x1xf32, #tpu.memory_space<vmem>>, vector<24x1xf32>
    %c56 = arith.constant 56 : index
    %c0_6 = arith.constant 0 : index
    %4 = vector.load %arg2[%c56, %c0_6] : memref<96x32xbf16, #tpu.memory_space<vmem>>, vector<32x32xbf16>
    %c56_7 = arith.constant 56 : index
    %c0_8 = arith.constant 0 : index
    %5 = vector.load %arg3[%c56_7, %c0_8] : memref<96x1xf32, #tpu.memory_space<vmem>>, vector<32x1xf32>
    %6 = vector.extract_strided_slice %4 {offsets = [0, 0], sizes = [32, 24], strides = [1, 1]} : vector<32x32xbf16> to vector<32x24xbf16>
    %7 = vector.extract_strided_slice %4 {offsets = [0, 24], sizes = [32, 8], strides = [1, 1]} : vector<32x32xbf16> to vector<32x8xbf16>
    %c88 = arith.constant 88 : index
    %c0_9 = arith.constant 0 : index
    %8 = vector.load %arg2[%c88, %c0_9] : memref<96x32xbf16, #tpu.memory_space<vmem>>, vector<8x32xbf16>
    %c88_10 = arith.constant 88 : index
    %c0_11 = arith.constant 0 : index
    %9 = vector.load %arg3[%c88_10, %c0_11] : memref<96x1xf32, #tpu.memory_space<vmem>>, vector<8x1xf32>
    %c0_12 = arith.constant 0 : index
    %c0_13 = arith.constant 0 : index
    %10 = vector.load %arg1[%c0_12, %c0_13] : memref<8x2048xf32, #tpu.memory_space<vmem>>, vector<8x512xf32>
    %11 = arith.truncf %10 : vector<8x512xf32> to vector<8x512xbf16>
    %cst = arith.constant dense<0.000000e+00> : vector<32x512xf32>
    %12 = tpu.matmul %0, %11, %cst {dimension_numbers = #tpu.dot_dimension_numbers<[1], [0], [0], [1], [0, 0, 1, 1], [], []>} : vector<32x8xbf16>, vector<8x512xbf16>, vector<32x512xf32> -> vector<32x512xf32>
    %13 = vector.broadcast %1 : vector<32x1xf32> to vector<32x512xf32>
    %14 = arith.addf %12, %13 : vector<32x512xf32>
    %cst_14 = arith.constant 0.000000e+00 : f32
    %15 = vector.broadcast %cst_14 : f32 to vector<32x512xf32>
    %16 = arith.maximumf %14, %15 : vector<32x512xf32>
    %17 = arith.truncf %16 : vector<32x512xf32> to vector<32x512xbf16>
    %cst_15 = arith.constant dense<0.000000e+00> : vector<24x512xf32>
    %18 = tpu.matmul %2, %17, %cst_15 {dimension_numbers = #tpu.dot_dimension_numbers<[1], [0], [0], [1], [0, 0, 1, 1], [], []>} : vector<24x32xbf16>, vector<32x512xbf16>, vector<24x512xf32> -> vector<24x512xf32>
    %19 = vector.broadcast %3 : vector<24x1xf32> to vector<24x512xf32>
    %20 = arith.addf %18, %19 : vector<24x512xf32>
    %cst_16 = arith.constant 0.000000e+00 : f32
    %21 = vector.broadcast %cst_16 : f32 to vector<24x512xf32>
    %22 = arith.maximumf %20, %21 : vector<24x512xf32>
    %23 = arith.truncf %22 : vector<24x512xf32> to vector<24x512xbf16>
    %cst_17 = arith.constant dense<0.000000e+00> : vector<32x512xf32>
    %24 = tpu.matmul %6, %23, %cst_17 {dimension_numbers = #tpu.dot_dimension_numbers<[1], [0], [0], [1], [0, 0, 1, 1], [], []>} : vector<32x24xbf16>, vector<24x512xbf16>, vector<32x512xf32> -> vector<32x512xf32>
    %cst_18 = arith.constant dense<0.000000e+00> : vector<32x512xf32>
    %25 = tpu.matmul %7, %11, %cst_18 {dimension_numbers = #tpu.dot_dimension_numbers<[1], [0], [0], [1], [0, 0, 1, 1], [], []>} : vector<32x8xbf16>, vector<8x512xbf16>, vector<32x512xf32> -> vector<32x512xf32>
    %26 = arith.addf %24, %25 : vector<32x512xf32>
    %27 = vector.broadcast %5 : vector<32x1xf32> to vector<32x512xf32>
    %28 = arith.addf %26, %27 : vector<32x512xf32>
    %cst_19 = arith.constant 0.000000e+00 : f32
    %29 = vector.broadcast %cst_19 : f32 to vector<32x512xf32>
    %30 = arith.maximumf %28, %29 : vector<32x512xf32>
    %31 = arith.truncf %30 : vector<32x512xf32> to vector<32x512xbf16>
    %cst_20 = arith.constant dense<0.000000e+00> : vector<8x512xf32>
    %32 = tpu.matmul %8, %31, %cst_20 {dimension_numbers = #tpu.dot_dimension_numbers<[1], [0], [0], [1], [0, 0, 1, 1], [], []>} : vector<8x32xbf16>, vector<32x512xbf16>, vector<8x512xf32> -> vector<8x512xf32>
    %33 = vector.broadcast %9 : vector<8x1xf32> to vector<8x512xf32>
    %34 = arith.addf %32, %33 : vector<8x512xf32>
    %35 = vector.extract_strided_slice %34 {offsets = [0, 0], sizes = [4, 512], strides = [1, 1]} : vector<8x512xf32> to vector<4x512xf32>
    %c0_21 = arith.constant 0 : index
    %c0_22 = arith.constant 0 : index
    %36 = vector.load %arg4[%c0_21, %c0_22] : memref<4x2048xf32, #tpu.memory_space<vmem>>, vector<4x512xf32>
    tpu.vector_store %arg4[%c0_21, %c0_22], %35 {strides = array<i32>} : memref<4x2048xf32, #tpu.memory_space<vmem>>, vector<4x512xf32>,
    %c0_23 = arith.constant 0 : index
    %c512 = arith.constant 512 : index
    %37 = vector.load %arg1[%c0_23, %c512] : memref<8x2048xf32, #tpu.memory_space<vmem>>, vector<8x512xf32>
    %38 = arith.truncf %37 : vector<8x512xf32> to vector<8x512xbf16>
    %cst_24 = arith.constant dense<0.000000e+00> : vector<32x512xf32>
    %39 = tpu.matmul %0, %38, %cst_24 {dimension_numbers = #tpu.dot_dimension_numbers<[1], [0], [0], [1], [0, 0, 1, 1], [], []>} : vector<32x8xbf16>, vector<8x512xbf16>, vector<32x512xf32> -> vector<32x512xf32>
    %40 = vector.broadcast %1 : vector<32x1xf32> to vector<32x512xf32>
    %41 = arith.addf %39, %40 : vector<32x512xf32>
    %cst_25 = arith.constant 0.000000e+00 : f32
    %42 = vector.broadcast %cst_25 : f32 to vector<32x512xf32>
    %43 = arith.maximumf %41, %42 : vector<32x512xf32>
    %44 = arith.truncf %43 : vector<32x512xf32> to vector<32x512xbf16>
    %cst_26 = arith.constant dense<0.000000e+00> : vector<24x512xf32>
    %45 = tpu.matmul %2, %44, %cst_26 {dimension_numbers = #tpu.dot_dimension_numbers<[1], [0], [0], [1], [0, 0, 1, 1], [], []>} : vector<24x32xbf16>, vector<32x512xbf16>, vector<24x512xf32> -> vector<24x512xf32>
    %46 = vector.broadcast %3 : vector<24x1xf32> to vector<24x512xf32>
    %47 = arith.addf %45, %46 : vector<24x512xf32>
    %cst_27 = arith.constant 0.000000e+00 : f32
    %48 = vector.broadcast %cst_27 : f32 to vector<24x512xf32>
    %49 = arith.maximumf %47, %48 : vector<24x512xf32>
    %50 = arith.truncf %49 : vector<24x512xf32> to vector<24x512xbf16>
    %cst_28 = arith.constant dense<0.000000e+00> : vector<32x512xf32>
    %51 = tpu.matmul %6, %50, %cst_28 {dimension_numbers = #tpu.dot_dimension_numbers<[1], [0], [0], [1], [0, 0, 1, 1], [], []>} : vector<32x24xbf16>, vector<24x512xbf16>, vector<32x512xf32> -> vector<32x512xf32>
    %cst_29 = arith.constant dense<0.000000e+00> : vector<32x512xf32>
    %52 = tpu.matmul %7, %38, %cst_29 {dimension_numbers = #tpu.dot_dimension_numbers<[1], [0], [0], [1], [0, 0, 1, 1], [], []>} : vector<32x8xbf16>, vector<8x512xbf16>, vector<32x512xf32> -> vector<32x512xf32>
    %53 = arith.addf %51, %52 : vector<32x512xf32>
    %54 = vector.broadcast %5 : vector<32x1xf32> to vector<32x512xf32>
    %55 = arith.addf %53, %54 : vector<32x512xf32>
    %cst_30 = arith.constant 0.000000e+00 : f32
    %56 = vector.broadcast %cst_30 : f32 to vector<32x512xf32>
    %57 = arith.maximumf %55, %56 : vector<32x512xf32>
    %58 = arith.truncf %57 : vector<32x512xf32> to vector<32x512xbf16>
    %cst_31 = arith.constant dense<0.000000e+00> : vector<8x512xf32>
    %59 = tpu.matmul %8, %58, %cst_31 {dimension_numbers = #tpu.dot_dimension_numbers<[1], [0], [0], [1], [0, 0, 1, 1], [], []>} : vector<8x32xbf16>, vector<32x512xbf16>, vector<8x512xf32> -> vector<8x512xf32>
    %60 = vector.broadcast %9 : vector<8x1xf32> to vector<8x512xf32>
    %61 = arith.addf %59, %60 : vector<8x512xf32>
    %62 = vector.extract_strided_slice %61 {offsets = [0, 0], sizes = [4, 512], strides = [1, 1]} : vector<8x512xf32> to vector<4x512xf32>
    %c0_32 = arith.constant 0 : index
    %c512_33 = arith.constant 512 : index
    %63 = vector.load %arg4[%c0_32, %c512_33] : memref<4x2048xf32, #tpu.memory_space<vmem>>, vector<4x512xf32>
    tpu.vector_store %arg4[%c0_32, %c512_33], %62 {strides = array<i32>} : memref<4x2048xf32, #tpu.memory_space<vmem>>, vector<4x512xf32>,
    %c0_34 = arith.constant 0 : index
    %c1024 = arith.constant 1024 : index
    %64 = vector.load %arg1[%c0_34, %c1024] : memref<8x2048xf32, #tpu.memory_space<vmem>>, vector<8x512xf32>
    %65 = arith.truncf %64 : vector<8x512xf32> to vector<8x512xbf16>
    %cst_35 = arith.constant dense<0.000000e+00> : vector<32x512xf32>
    %66 = tpu.matmul %0, %65, %cst_35 {dimension_numbers = #tpu.dot_dimension_numbers<[1], [0], [0], [1], [0, 0, 1, 1], [], []>} : vector<32x8xbf16>, vector<8x512xbf16>, vector<32x512xf32> -> vector<32x512xf32>
    %67 = vector.broadcast %1 : vector<32x1xf32> to vector<32x512xf32>
    %68 = arith.addf %66, %67 : vector<32x512xf32>
    %cst_36 = arith.constant 0.000000e+00 : f32
    %69 = vector.broadcast %cst_36 : f32 to vector<32x512xf32>
    %70 = arith.maximumf %68, %69 : vector<32x512xf32>
    %71 = arith.truncf %70 : vector<32x512xf32> to vector<32x512xbf16>
    %cst_37 = arith.constant dense<0.000000e+00> : vector<24x512xf32>
    %72 = tpu.matmul %2, %71, %cst_37 {dimension_numbers = #tpu.dot_dimension_numbers<[1], [0], [0], [1], [0, 0, 1, 1], [], []>} : vector<24x32xbf16>, vector<32x512xbf16>, vector<24x512xf32> -> vector<24x512xf32>
    %73 = vector.broadcast %3 : vector<24x1xf32> to vector<24x512xf32>
    %74 = arith.addf %72, %73 : vector<24x512xf32>
    %cst_38 = arith.constant 0.000000e+00 : f32
    %75 = vector.broadcast %cst_38 : f32 to vector<24x512xf32>
    %76 = arith.maximumf %74, %75 : vector<24x512xf32>
    %77 = arith.truncf %76 : vector<24x512xf32> to vector<24x512xbf16>
    %cst_39 = arith.constant dense<0.000000e+00> : vector<32x512xf32>
    %78 = tpu.matmul %6, %77, %cst_39 {dimension_numbers = #tpu.dot_dimension_numbers<[1], [0], [0], [1], [0, 0, 1, 1], [], []>} : vector<32x24xbf16>, vector<24x512xbf16>, vector<32x512xf32> -> vector<32x512xf32>
    %cst_40 = arith.constant dense<0.000000e+00> : vector<32x512xf32>
    %79 = tpu.matmul %7, %65, %cst_40 {dimension_numbers = #tpu.dot_dimension_numbers<[1], [0], [0], [1], [0, 0, 1, 1], [], []>} : vector<32x8xbf16>, vector<8x512xbf16>, vector<32x512xf32> -> vector<32x512xf32>
    %80 = arith.addf %78, %79 : vector<32x512xf32>
    %81 = vector.broadcast %5 : vector<32x1xf32> to vector<32x512xf32>
    %82 = arith.addf %80, %81 : vector<32x512xf32>
    %cst_41 = arith.constant 0.000000e+00 : f32
    %83 = vector.broadcast %cst_41 : f32 to vector<32x512xf32>
    %84 = arith.maximumf %82, %83 : vector<32x512xf32>
    %85 = arith.truncf %84 : vector<32x512xf32> to vector<32x512xbf16>
    %cst_42 = arith.constant dense<0.000000e+00> : vector<8x512xf32>
    %86 = tpu.matmul %8, %85, %cst_42 {dimension_numbers = #tpu.dot_dimension_numbers<[1], [0], [0], [1], [0, 0, 1, 1], [], []>} : vector<8x32xbf16>, vector<32x512xbf16>, vector<8x512xf32> -> vector<8x512xf32>
    %87 = vector.broadcast %9 : vector<8x1xf32> to vector<8x512xf32>
    %88 = arith.addf %86, %87 : vector<8x512xf32>
    %89 = vector.extract_strided_slice %88 {offsets = [0, 0], sizes = [4, 512], strides = [1, 1]} : vector<8x512xf32> to vector<4x512xf32>
    %c0_43 = arith.constant 0 : index
    %c1024_44 = arith.constant 1024 : index
    %90 = vector.load %arg4[%c0_43, %c1024_44] : memref<4x2048xf32, #tpu.memory_space<vmem>>, vector<4x512xf32>
    tpu.vector_store %arg4[%c0_43, %c1024_44], %89 {strides = array<i32>} : memref<4x2048xf32, #tpu.memory_space<vmem>>, vector<4x512xf32>,
    %c0_45 = arith.constant 0 : index
    %c1536 = arith.constant 1536 : index
    %91 = vector.load %arg1[%c0_45, %c1536] : memref<8x2048xf32, #tpu.memory_space<vmem>>, vector<8x512xf32>
    %92 = arith.truncf %91 : vector<8x512xf32> to vector<8x512xbf16>
    %cst_46 = arith.constant dense<0.000000e+00> : vector<32x512xf32>
    %93 = tpu.matmul %0, %92, %cst_46 {dimension_numbers = #tpu.dot_dimension_numbers<[1], [0], [0], [1], [0, 0, 1, 1], [], []>} : vector<32x8xbf16>, vector<8x512xbf16>, vector<32x512xf32> -> vector<32x512xf32>
    %94 = vector.broadcast %1 : vector<32x1xf32> to vector<32x512xf32>
    %95 = arith.addf %93, %94 : vector<32x512xf32>
    %cst_47 = arith.constant 0.000000e+00 : f32
    %96 = vector.broadcast %cst_47 : f32 to vector<32x512xf32>
    %97 = arith.maximumf %95, %96 : vector<32x512xf32>
    %98 = arith.truncf %97 : vector<32x512xf32> to vector<32x512xbf16>
    %cst_48 = arith.constant dense<0.000000e+00> : vector<24x512xf32>
    %99 = tpu.matmul %2, %98, %cst_48 {dimension_numbers = #tpu.dot_dimension_numbers<[1], [0], [0], [1], [0, 0, 1, 1], [], []>} : vector<24x32xbf16>, vector<32x512xbf16>, vector<24x512xf32> -> vector<24x512xf32>
    %100 = vector.broadcast %3 : vector<24x1xf32> to vector<24x512xf32>
    %101 = arith.addf %99, %100 : vector<24x512xf32>
    %cst_49 = arith.constant 0.000000e+00 : f32
    %102 = vector.broadcast %cst_49 : f32 to vector<24x512xf32>
    %103 = arith.maximumf %101, %102 : vector<24x512xf32>
    %104 = arith.truncf %103 : vector<24x512xf32> to vector<24x512xbf16>
    %cst_50 = arith.constant dense<0.000000e+00> : vector<32x512xf32>
    %105 = tpu.matmul %6, %104, %cst_50 {dimension_numbers = #tpu.dot_dimension_numbers<[1], [0], [0], [1], [0, 0, 1, 1], [], []>} : vector<32x24xbf16>, vector<24x512xbf16>, vector<32x512xf32> -> vector<32x512xf32>
    %cst_51 = arith.constant dense<0.000000e+00> : vector<32x512xf32>
    %106 = tpu.matmul %7, %92, %cst_51 {dimension_numbers = #tpu.dot_dimension_numbers<[1], [0], [0], [1], [0, 0, 1, 1], [], []>} : vector<32x8xbf16>, vector<8x512xbf16>, vector<32x512xf32> -> vector<32x512xf32>
    %107 = arith.addf %105, %106 : vector<32x512xf32>
    %108 = vector.broadcast %5 : vector<32x1xf32> to vector<32x512xf32>
    %109 = arith.addf %107, %108 : vector<32x512xf32>
    %cst_52 = arith.constant 0.000000e+00 : f32
    %110 = vector.broadcast %cst_52 : f32 to vector<32x512xf32>
    %111 = arith.maximumf %109, %110 : vector<32x512xf32>
    %112 = arith.truncf %111 : vector<32x512xf32> to vector<32x512xbf16>
    %cst_53 = arith.constant dense<0.000000e+00> : vector<8x512xf32>
    %113 = tpu.matmul %8, %112, %cst_53 {dimension_numbers = #tpu.dot_dimension_numbers<[1], [0], [0], [1], [0, 0, 1, 1], [], []>} : vector<8x32xbf16>, vector<32x512xbf16>, vector<8x512xf32> -> vector<8x512xf32>
    %114 = vector.broadcast %9 : vector<8x1xf32> to vector<8x512xf32>
    %115 = arith.addf %113, %114 : vector<8x512xf32>
    %116 = vector.extract_strided_slice %115 {offsets = [0, 0], sizes = [4, 512], strides = [1, 1]} : vector<8x512xf32> to vector<4x512xf32>
    %c0_54 = arith.constant 0 : index
    %c1536_55 = arith.constant 1536 : index
    %117 = vector.load %arg4[%c0_54, %c1536_55] : memref<4x2048xf32, #tpu.memory_space<vmem>>, vector<4x512xf32>
    tpu.vector_store %arg4[%c0_54, %c1536_55], %116 {strides = array<i32>} : memref<4x2048xf32, #tpu.memory_space<vmem>>, vector<4x512xf32>,
    return
  }
  func.func @transform_0(%arg0: i32) -> (i32, i32) {
    %c0_i32 = arith.constant 0 : i32
    %c0_i32_0 = arith.constant 0 : i32
    return %c0_i32, %arg0 : i32, i32
  }
  func.func @transform_1(%arg0: i32) -> (i32, i32) {
    %c0_i32 = arith.constant 0 : i32
    %c0_i32_0 = arith.constant 0 : i32
    %c0_i32_1 = arith.constant 0 : i32
    return %c0_i32, %c0_i32_0 : i32, i32
  }
  func.func @transform_2(%arg0: i32) -> (i32, i32) {
    %c0_i32 = arith.constant 0 : i32
    %c0_i32_0 = arith.constant 0 : i32
    %c0_i32_1 = arith.constant 0 : i32
    return %c0_i32, %c0_i32_0 : i32, i32
  }
  func.func @transform_3(%arg0: i32) -> (i32, i32) {
    %c0_i32 = arith.constant 0 : i32
    %c0_i32_0 = arith.constant 0 : i32
    return %c0_i32, %arg0 : i32, i32
  }
}

</mosaic_0001>

<bundles_post_ra>
// kernel: tpu_custom_call.1
= control target key start
LH: loop header
LB: loop body
LE: loop exit
PB: predicated region body
PF: predicated region fallthrough
CT: control target
= control target key end

     0   :  { %8 = vsyncpa [#allocation3], 0  ;;  %s4140_s0 = inlined_call_operand.hbm [shape: f32[8,8192], index: 0, kind: input, shape index: {}]   ;;  %s4141_s1 = inlined_call_operand.vmem [shape: bf16[96,32], index: 1, kind: input, shape index: {}]   ;;  %s4142_s2 = inlined_call_operand.vmem [shape: f32[96,1], index: 2, kind: input, shape index: {}]   ;;  %s4143_s3 = inlined_call_operand.hbm [shape: f32[4,8192], index: 3, kind: output, shape index: {}]  }
   0x1   :  { %10 = vsyncpa [#allocation3 + $0x1], 0 }
   0x2   :  { %11 = vsyncpa [#allocation4], 0 }
   0x3   :  { %13 = vsyncpa [#allocation4 + $0x1], 0  ;;  %s3301_s12 = smov 0   ;;  %s3303_s13 = smov 0  }
   0x4   :  { %s3305_s14 = smov 0   ;;  %s3307_s15 = smov 0  }
   0x5 LB: > { %s3322_s16 = sadd.s32 4294967295, %s3275_s15   ;;  %s2934_s17 = sadd.s32 4294967294, %s3275_s15   ;;  %s3275_s15 = sphi %s3307_s15, %s4157_s15   ;;  %s3271_s14 = sphi %s3305_s14, %s4156_s14   ;;  %s3267_s13 = sphi %s3303_s13, %s4155_s13   ;;  %s3263_s12 = sphi %s3301_s12, %s4154_s12  }
   0x6   : > { %s3326_s18 = sadd.s32 1, %s3275_s15   ;;  %s26_s19 = sadd.s32 1, %s3271_s14 }
   0x7   : > { %s23_s20 = ssub.s32 %s3275_s15, %s3326_s18  ;;  %p33_p0 = scmp.ne.s32.totalorder %s3271_s14, %s3267_s13 }
   0x8   : > { %p24_p1 = scmp.eq.s32.totalorder %s23_s20, 0  ;;  %p34_p2 = scmp.eq.s32.totalorder %s3275_s15, 0 }
   0x9   : > { %p39_p3 = scmp.ne.s32.totalorder %s3267_s13, %s3263_s12  ;;  %p40_p4 = scmp.eq.s32.totalorder %s3322_s16, 0 }
   0xa   : > { %s3338_s21 = scalar_select %p24_p1, %s3271_s14, %s26_s19  }
   0xb   : > { %p3340_p5 = por %p34_p2, %p33_p0  ;;  %p3344_p6 = por %p40_p4, %p39_p3 }
   0xc   : > { %p105_p7 = scmp.eq.s32.totalorder %s3322_s16, 3  ;;  %p111_p8 = scmp.eq.s32.totalorder %s2934_s17, 3 }
   0xd   : > { %p3128_p9 = scmp.lt.s32.totalorder %s3275_s15, 4  ;;  %s137_s26 = sand.u32 1, %s3271_s14  }
   0xe   : > { %p3350_p10 = por %p105_p7, %p33_p0  ;;  %p3354_p11 = por %p111_p8, %p39_p3 }
   0xf   : > { %s3050_s27 = sshll.u32 %s3275_s15, 11  ;;  %s2937_s28 = sshll.u32 %s137_s26, 7 }
  0x10   : > { %s4147_s24 = scalar_select %p3350_p10, 1, 0 }
  0x11   : > { %s4148_s25 = scalar_select %p3354_p11, 1, 0 }
  0x12   : > { %s3363_s4 = scalar_lea.hbm %s4140_s0, %s3050_s27  ;;  %s141_s5 = scalar_lea.vmem [#allocation2], %s2937_s28 }
  0x13   : > { %s149_s6 = sshll.u32 %s141_s5, 4  ;;  %p3367_p12 = pnand %p3128_p9, %p3340_p5  ;;  %s3371_s6 = int_to_ptr.vmem [resolvable:$true] %s149_s6 }
  0x14   : > { %s138_s8 = scalar_lea.sflag [#allocation3], %s137_s26  ;;  %s3179_s9 = scalar_lea.hbm %s3363_s4, 2048 }
  0x15   : > { %p3180_p1 = scmp.ne.s32.totalorder %s3363_s4, %s3179_s9  ;;  %p3181_p2 = pneg %p3367_p12 }
  0x16   : > { %s3184_s17 = scalar_lea.hbm %s4140_s0, 8192  ;;  %p3185_p5 = scmp.lt.u32.totalorder %s3363_s4, %s4140_s0 }
  0x17   : > { %p3182_p3 = pnand %p3181_p2, %p3180_p1  ;;  %p3186_p7 = scmp.lt.u32.totalorder %s3184_s17, %s3179_s9 }
  0x18   : > { %p3188_p9 = scmp.lt.u32.totalorder %s3179_s9, %s3363_s4 }
  0x19   : > { %p3183_p4 = pneg %p3182_p3  ;;  %p3187_p8 = por %p3186_p7, %p3185_p5 }
  0x1b   : > { %p3189_p13 = por %p3188_p9, %p3187_p8 }
  0x1d   : > { %p3190_p0 = pnand %p3189_p13, %p3183_p4 }
  0x1f   : > { %3193 = shalt.err (!%p3190_p0)
}
  0x20   : > { %s3194_s22 = scalar_lea.vmem %s3371_s6, 2048  ;;  %s3277_s26 = smov [#allocation2]  }
  0x21   : > { %p3195_p1 = scmp.ne.s32.totalorder %s3371_s6, %s3194_s22  ;;  %s3199_s27 = sshll.u32 %s3277_s26, 4  ;;  %s3200_s27 = int_to_ptr.vmem [resolvable:$false] %s3199_s27 }
  0x22   : > { %s3201_s28 = scalar_lea.vmem %s3200_s27, 4096  ;;  %p3202_p10 = scmp.lt.s32.totalorder %s3371_s6, %s3200_s27 }
  0x23   : > { %p3197_p3 = pnand %p3195_p1, %p3181_p2  ;;  %p3203_p5 = scmp.lt.s32.totalorder %s3201_s28, %s3194_s22 }
  0x25   : > { %p3198_p11 = pneg %p3197_p3  ;;  %p3204_p7 = por %p3203_p5, %p3202_p10 }
  0x27   : > { %p3205_p8 = pnand %p3204_p7, %p3198_p11 }
  0x29   : > { %3208 = shalt.err (!%p3205_p8)
}
  0x2a   : > { %3123 = dma.hbm_to_vmem [thread:$0]  (!%p3367_p12), %s3363_s4, 2048, %s3371_s6, %s138_s8  }
  0x2b   : > { %p4150_p13 = scmp.lt.s32.totalorder %s3275_s15, 5  ;;  %p4151_p0 = scmp.ge.s32.totalorder %s3275_s15, 1 }
  0x2d   : > { %p155_p2 = pnand %p4151_p0, %p4150_p13 }
  0x2e   : > { %s3405_s29 = sand.u32 (!%p155_p2), 1, %s3267_s13  }
  0x2f   : > { %158 = sbr.rel (%p155_p2) target bundleno = 3106 (0xc22), region = 32  ;;  %s2941_s30 = sshll.u32 (!%p155_p2), %s3405_s29, 7 }
  0x30   : > { %s161_s5 = scalar_lea.sflag (!%p155_p2), [#allocation3], %s3405_s29  ;;  %s3409_s9 = scalar_lea.vmem (!%p155_p2), [#allocation2], %s2941_s30 }
  0x36   : > { %3254 = dma.done.wait (%p3344_p6), %s161_s5, 2048  }
  0x37   : > { %3256 = vsyncadd (%p3344_p6), %s161_s5, 4294965248  ;;  %v3278_v0 = vmov 0   ;;  %v215_v1 = vld [vmem:[%s3409_s9 + $0x8] sm:$0xff]  ;;  %vm259_vm0 = vcmask 1043456   ;;  %v217_v2 = vld [vmem:[%s3409_s9 + $0x18] sm:$0xff]  ;;  %vm252_vm1 = vcmask 64512  }
  0x38   : > { %304 = vmatprep.mubr.bf16.mxu0 %v3278_v0  ;;  %357 = vmatprep.mubr.bf16.mxu1 %v3278_v0  ;;  %v214_v3 = vld [vmem:[%s3409_s9] sm:$0xff]  ;;  %v3422_v4 = vpack.c.bf16 %v215_v1, %v215_v1  ;;  %v3424_v5 = vpack.c.bf16 %v217_v2, %v217_v2  ;;  %v216_v7 = vld [vmem:[%s3409_s9 + $0x10] sm:$0xff]  ;;  %v195_v14 = vld [vmem:[%s4142_s2 + $0x8] sm:$0xff]  ;;  %s3279_s11 = smov 104   ;;  %vm425_vm2 = vcmask 261120   ;;  %vm680_vm3 = vcmask 195584  }
  0x39   : > { %3164 = vset.pattern.permute.xlu0 %v3278_v0  ;;  %3165 = vset.pattern.permute.xlu1 %v3278_v0  ;;  %v218_v6 = vpack.c.bf16 %v214_v3, %v214_v3  ;;  %v220_v8 = vpack.c.bf16 %v216_v7, %v216_v7  ;;  %v3437_v10 = vld [vmem:[%s4141_s1] sm:$0xff]   ;;  %v196_v13 = vld [vmem:[%s4142_s2 + $0x10] sm:$0xff]  ;;  %v197_v15 = vld [vmem:[%s4142_s2 + $0x18] sm:$0xff]  ;;  %s2942_s17 = sshll.u32 %s3405_s29, 6  ;;  %p4152_p10 = scmp.ne.s32.totalorder %s4147_s24, 0 }
  0x3a   : > { %2945 = vmatprep.subr.msk.bf16.mxu0 %vm259_vm0, %v3422_v4  ;;  %2948 = vmatprep.subr.msk.bf16.mxu1 %vm259_vm0, %v3424_v5  ;;  %v194_v11 = vld [vmem:[%s4142_s2] sm:$0xff]  ;;  %v3468_v17 = vld [vmem:[%s4141_s1 + $0x8] sm:$0xff]   ;;  %v203_v19 = vld [vmem:[%s4142_s2 + $0x30] sm:$0xff]  ;;  %s3685_s19 = scalar_lea.vmem [#allocation5], %s2942_s17  ;;  %s3280_s28 = smov [#allocation5]  }
  0x3b   : > { %v3432_v9 = vsel %vm259_vm0, %v218_v6, 0  ;;  %v3444_v12 = vsel %vm259_vm0, %v220_v8, 0  ;;  %224 = vperm.xlu0 %3164, %v194_v11   ;;  %234 = vperm.xlu1 %3165, %v196_v13   ;;  %v201_v16 = vld [vmem:[%s4142_s2 + $0x20] sm:$0xff]  ;;  %v202_v18 = vld [vmem:[%s4142_s2 + $0x28] sm:$0xff]  ;;  %v208_v22 = vld [vmem:[%s4142_s2 + $0x38] sm:$0xff]  ;;  %s2864_s17 = sshll.u32 %s3685_s19, 4  ;;  %s4097_s17 = int_to_ptr.vmem [resolvable:$true] %s2864_s17 }
  0x3c   : > { %273 = vmatpush1.bf16.msra.mxu0 %v3432_v9  ;;  %326 = vmatpush1.bf16.msra.mxu1 %v3444_v12  ;;  %v3479_v20 = vld [vmem:[%s4141_s1 + $0x1c] sm:$0xff]   ;;  %v3489_v21 = vld [vmem:[%s4141_s1 + $0x24] sm:$0xff]   ;;  %v211_v25 = vld [vmem:[%s4142_s2 + $0x50] sm:$0xff]  ;;  %s3209_s27 = scalar_lea.vmem %s4097_s17, 1024  ;;  %s3213_s30 = sshll.u32 %s3280_s28, 4  ;;  %s3214_s30 = int_to_ptr.vmem [resolvable:$false] %s3213_s30 }
  0x3d   : > { %v209_v23 = vld [vmem:[%s4142_s2 + $0x40] sm:$0xff]  ;;  %v210_v24 = vld [vmem:[%s4142_s2 + $0x48] sm:$0xff]  ;;  %v213_v26 = vld [vmem:[%s4142_s2 + $0x58] sm:$0xff]  ;;  %p3210_p6 = scmp.ne.s32.totalorder %s4097_s17, %s3209_s27  ;;  %s3215_s5 = scalar_lea.vmem %s3214_s30, 2048 }
  0x3e   : > { %p3216_p4 = scmp.lt.s32.totalorder %s4097_s17, %s3214_s30  ;;  %p3217_p9 = scmp.lt.s32.totalorder %s3215_s5, %s3209_s27 }
  0x3f   : > { %2946 = vmatmul.mubr.msk.bf16.vlgmr.msra.gmra.mrb[0].mxu0 %vm252_vm1, %v3437_v10  ;;  %2949 = vmatmul.mubr.msk.bf16.vlgmr.msra.gmra.mrb[0].mxu1 %vm252_vm1, %v3437_v10  ;;  %p3211_p11 = pnand %p3210_p6, %p4152_p10 }
  0x40   : > { %314 = vmatprep.mubr.bf16.mxu0 %v3278_v0  ;;  %367 = vmatprep.mubr.bf16.mxu1 %v3278_v0  ;;  %p3218_p1 = por %p3217_p9, %p3216_p4 }
  0x41   : > { %229 = vperm.xlu0 %3164, %v195_v14   ;;  %239 = vperm.xlu1 %3165, %v197_v15   ;;  %p3212_p12 = pneg %p3211_p11 }
  0x43   : > { %p3219_p3 = pnand %p3218_p1, %p3212_p12 }
  0x45   : > { %404 = vperm.xlu0 %3164, %v201_v16   ;;  %409 = vperm.xlu1 %3165, %v202_v18  }
  0x47   : > { %2947 = vmatmul.mubr.msk.bf16.gmra.mrb[4].mxu0 %vm252_vm1, %v3468_v17  ;;  %2950 = vmatmul.mubr.msk.bf16.gmra.mrb[4].mxu1 %vm252_vm1, %v3468_v17 }
  0x48   : > { %464 = vmatprep.mubr.bf16.mxu0 %v3278_v0  ;;  %515 = vmatprep.mubr.bf16.mxu1 %v3278_v0 }
  0x49   : > { %414 = vperm.xlu0 %3164, %v203_v19   ;;  %564 = vrot.lane.b32.xlu1 %v3479_v20, %s3279_s11 }
  0x4d   : > { %566 = vrot.lane.b32.xlu0 %v3489_v21, %s3279_s11  ;;  %807 = vperm.xlu1 %3165, %v208_v22   ;;  %s3051_s11 = sshll.u32 %s3322_s16, 10  ;;  %s2850_s16 = scalar_lea.sflag [#allocation4], %s3405_s29 }
  0x4e   : > { %s4095_s26 = scalar_lea.hbm %s4143_s3, %s3051_s11 }
  0x51   : > { %812 = vperm.xlu0 %3164, %v209_v23   ;;  %817 = vperm.xlu1 %3165, %v210_v24  }
  0x55   : > { %822 = vperm.xlu0 %3164, %v211_v25   ;;  %867 = vperm.xlu1 %3165, %v213_v26  }
  0xba   : > { %v3509_v27 = vpop.permute.xlu0 %224  ;;  %v3511_v28 = vpop.permute.xlu1 %234 }
  0xc0   : > { %v3513_v29 = vpop.permute.xlu0 %229  ;;  %v3523_v55 = vpop.permute.xlu1 %239 }
 0x112   : > { %v306_v30 = vpop.f32.mrb[0].mxu0  ;;  %v359_v32 = vpop.f32.mrb[0].mxu1 }
 0x113   : > { %v307_v31 = vadd.f32 %v306_v30, %v3509_v27  ;;  %v308_v33 = vpop.f32.mrb[1].mxu0  ;;  %v360_v34 = vadd.f32 %v359_v32, %v3509_v27  ;;  %v361_v36 = vpop.f32.mrb[1].mxu1 }
 0x114   : > { %v309_v35 = vadd.f32 %v308_v33, %v3509_v27  ;;  %v310_v37 = vpop.f32.mrb[2].mxu0  ;;  %v362_v38 = vadd.f32 %v361_v36, %v3509_v27  ;;  %v363_v40 = vpop.f32.mrb[2].mxu1 }
 0x115   : > { %v311_v39 = vadd.f32 %v310_v37, %v3513_v29  ;;  %v312_v41 = vpop.f32.mrb[3].mxu0  ;;  %v364_v42 = vadd.f32 %v363_v40, %v3513_v29  ;;  %v365_v44 = vpop.f32.mrb[3].mxu1  ;;  %v378_v45 = vmax.f32 %v307_v31, 0.0  ;;  %v380_v48 = vmax.f32 %v360_v34, 0.0 }
 0x116   : > { %v313_v43 = vadd.f32 %v312_v41, %v3513_v29  ;;  %v366_v47 = vadd.f32 %v365_v44, %v3513_v29  ;;  %v379_v49 = vmax.f32 %v309_v35, 0.0  ;;  %v381_v52 = vmax.f32 %v362_v38, 0.0  ;;  %v3536_v35 = vld [vmem:[%s4141_s1 + $0x10] sm:$0xff]  }
 0x117   : > { %v382_v46 = vmax.f32 %v311_v39, 0.0  ;;  %v384_v50 = vmax.f32 %v364_v42, 0.0 }
 0x118   : > { %v383_v51 = vmax.f32 %v313_v43, 0.0  ;;  %v385_v54 = vmax.f32 %v366_v47, 0.0 }
 0x119   : > { %v394_v53 = vpack.c.bf16 %v382_v46, %v378_v45  ;;  %v396_v56 = vpack.c.bf16 %v384_v50, %v380_v48 }
 0x11a   : > { %v395_v57 = vpack.c.bf16 %v383_v51, %v379_v49  ;;  %v316_v58 = vpop.f32.mrb[4].mxu0  ;;  %v397_v59 = vpack.c.bf16 %v385_v54, %v381_v52  ;;  %v369_v61 = vpop.f32.mrb[4].mxu1 }
 0x11b   : > { %v317_v60 = vadd.f32 %v316_v58, %v3511_v28  ;;  %v318_v62 = vpop.f32.mrb[5].mxu0  ;;  %v370_v63 = vadd.f32 %v369_v61, %v3511_v28  ;;  %v371_v2 = vpop.f32.mrb[5].mxu1 }
 0x11c   : > { %v319_v1 = vadd.f32 %v318_v62, %v3511_v28  ;;  %v320_v3 = vpop.f32.mrb[6].mxu0  ;;  %432 = vmatprep.subr.bf16.mxu0 %v395_v57  ;;  %v372_v6 = vadd.f32 %v371_v2, %v3511_v28  ;;  %v373_v8 = vpop.f32.mrb[6].mxu1  ;;  %483 = vmatprep.subr.bf16.mxu1 %v397_v59 }
 0x11d   : > { %v321_v7 = vadd.f32 %v320_v3, %v3523_v55  ;;  %v322_v11 = vpop.f32.mrb[7].mxu0  ;;  %433 = vmatpush1.bf16.msra.mxu0 %v394_v53  ;;  %v374_v13 = vadd.f32 %v373_v8, %v3523_v55  ;;  %v375_v15 = vpop.f32.mrb[7].mxu1  ;;  %484 = vmatpush1.bf16.msra.mxu1 %v396_v56  ;;  %v386_v16 = vmax.f32 %v317_v60, 0.0  ;;  %v388_v22 = vmax.f32 %v370_v63, 0.0 }
 0x11e   : > { %v323_v14 = vadd.f32 %v322_v11, %v3523_v55  ;;  %v376_v19 = vadd.f32 %v375_v15, %v3523_v55  ;;  %v387_v23 = vmax.f32 %v319_v1, 0.0  ;;  %v389_v26 = vmax.f32 %v372_v6, 0.0 }
 0x11f   : > { %v390_v18 = vmax.f32 %v321_v7, 0.0  ;;  %v392_v24 = vmax.f32 %v374_v13, 0.0 }
 0x120   : > { %v391_v25 = vmax.f32 %v323_v14, 0.0  ;;  %v393_v31 = vmax.f32 %v376_v19, 0.0 }
 0x121   : > { %v398_v30 = vpack.c.bf16 %v390_v18, %v386_v16  ;;  %v400_v32 = vpack.c.bf16 %v392_v24, %v388_v22 }
 0x122   : > { %v399_v33 = vpack.c.bf16 %v391_v25, %v387_v23  ;;  %v401_v34 = vpack.c.bf16 %v393_v31, %v389_v26 }
 0x124   : > { %434 = vmatprep.subr.bf16.mxu0 %v399_v33  ;;  %485 = vmatprep.subr.bf16.mxu1 %v401_v34 }
 0x125   : > { %435 = vmatpush1.bf16.msra.mxu0 %v398_v30  ;;  %486 = vmatpush1.bf16.msra.mxu1 %v400_v32 }
 0x126   : > { %2959 = vmatprep.subr.msk.bf16.mxu0 %vm259_vm0, %v3422_v4  ;;  %2962 = vmatprep.subr.msk.bf16.mxu1 %vm259_vm0, %v3424_v5  ;;  %v3553_v4 = vld [vmem:[%s4141_s1 + $0x18] ss:$0 sps:$4 sm:$0xff]   ;;  %v3557_v5 = vpop.permute.xlu1 %409 }
 0x128   : > { %2953 = vmatmul.mubr.msk.bf16.vlgmr.msra.gmra.mrb[8].mxu0 %vm425_vm2, %v3536_v35  ;;  %2955 = vmatmul.mubr.msk.bf16.vlgmr.msra.gmra.mrb[8].mxu1 %vm425_vm2, %v3536_v35 }
 0x129   : > { %474 = vmatprep.mubr.bf16.mxu0 %v3278_v0  ;;  %525 = vmatprep.mubr.bf16.mxu1 %v3278_v0 }
 0x12a   : > { %575 = vmatpush1.bf16.msra.mxu0 %v3432_v9  ;;  %628 = vmatpush1.bf16.msra.mxu1 %v3444_v12  ;;  %v3563_v9 = vpop.permute.xlu0 %404  ;;  %v3565_v12 = vpop.permute.xlu1 %564 }
 0x12e   : > { %v3569_v36 = vpop.permute.xlu0 %414 }
 0x130   : > { %2954 = vmatmul.mubr.msk.bf16.gmra.mrb[12].mxu0 %vm425_vm2, %v3553_v4  ;;  %2956 = vmatmul.mubr.msk.bf16.gmra.mrb[12].mxu1 %vm425_vm2, %v3553_v4 }
 0x131   : > { %606 = vmatprep.mubr.bf16.mxu0 %v3278_v0  ;;  %659 = vmatprep.mubr.bf16.mxu1 %v3278_v0 }
 0x132   : > { %v3575_v37 = vpop.permute.xlu0 %566 }
 0x138   : > { %2960 = vmatmul.mubr.msk.bf16.vlgmr.msra.gmra.mrb[16].mxu0 %vm252_vm1, %v3565_v12  ;;  %2963 = vmatmul.mubr.msk.bf16.vlgmr.msra.gmra.mrb[16].mxu1 %vm252_vm1, %v3565_v12 }
 0x139   : > { %616 = vmatprep.mubr.bf16.mxu0 %v3278_v0  ;;  %669 = vmatprep.mubr.bf16.mxu1 %v3278_v0 }
 0x140   : > { %2961 = vmatmul.mubr.msk.bf16.gmra.mrb[20].mxu0 %vm252_vm1, %v3575_v37  ;;  %2964 = vmatmul.mubr.msk.bf16.gmra.mrb[20].mxu1 %vm252_vm1, %v3575_v37 }
 0x141   : > { %731 = vmatprep.mubr.bf16.mxu0 %v3278_v0  ;;  %784 = vmatprep.mubr.bf16.mxu1 %v3278_v0 }
 0x1fb   : > { %v466_v38 = vpop.f32.mrb[8].mxu0  ;;  %v517_v40 = vpop.f32.mrb[8].mxu1 }
 0x1fc   : > { %v467_v39 = vadd.f32 %v466_v38, %v3563_v9  ;;  %v468_v41 = vpop.f32.mrb[9].mxu0  ;;  %v518_v42 = vadd.f32 %v517_v40, %v3563_v9  ;;  %v519_v44 = vpop.f32.mrb[9].mxu1 }
 0x1fd   : > { %v469_v43 = vadd.f32 %v468_v41, %v3563_v9  ;;  %v470_v45 = vpop.f32.mrb[10].mxu0  ;;  %v520_v46 = vadd.f32 %v519_v44, %v3563_v9  ;;  %v521_v48 = vpop.f32.mrb[10].mxu1 }
 0x1fe   : > { %v471_v47 = vadd.f32 %v470_v45, %v3557_v5  ;;  %v472_v49 = vpop.f32.mrb[11].mxu0  ;;  %v522_v50 = vadd.f32 %v521_v48, %v3557_v5  ;;  %v523_v52 = vpop.f32.mrb[11].mxu1  ;;  %v534_v53 = vmax.f32 %v467_v39, 0.0  ;;  %v536_v57 = vmax.f32 %v518_v42, 0.0 }
 0x1ff   : > { %v473_v51 = vadd.f32 %v472_v49, %v3557_v5  ;;  %v524_v56 = vadd.f32 %v523_v52, %v3557_v5  ;;  %v535_v58 = vmax.f32 %v469_v43, 0.0  ;;  %v537_v61 = vmax.f32 %v520_v46, 0.0  ;;  %v3611_v40 = vpop.permute.xlu1 %807  ;;  %v3613_v41 = vpop.permute.xlu0 %812 }
 0x200   : > { %v538_v54 = vmax.f32 %v471_v47, 0.0  ;;  %v540_v59 = vmax.f32 %v522_v50, 0.0 }
 0x201   : > { %v539_v60 = vmax.f32 %v473_v51, 0.0  ;;  %v541_v63 = vmax.f32 %v524_v56, 0.0 }
 0x202   : > { %v546_v62 = vpack.c.bf16 %v538_v54, %v534_v53  ;;  %v548_v1 = vpack.c.bf16 %v540_v59, %v536_v57 }
 0x203   : > { %v547_v2 = vpack.c.bf16 %v539_v60, %v535_v58  ;;  %v476_v3 = vpop.f32.mrb[12].mxu0  ;;  %v549_v6 = vpack.c.bf16 %v541_v63, %v537_v61  ;;  %v527_v8 = vpop.f32.mrb[12].mxu1 }
 0x204   : > { %v477_v7 = vadd.f32 %v476_v3, %v3569_v36  ;;  %v478_v11 = vpop.f32.mrb[13].mxu0  ;;  %v528_v13 = vadd.f32 %v527_v8, %v3569_v36  ;;  %v529_v15 = vpop.f32.mrb[13].mxu1 }
 0x205   : > { %v479_v14 = vadd.f32 %v478_v11, %v3569_v36  ;;  %v480_v16 = vpop.f32.mrb[14].mxu0  ;;  %699 = vmatprep.subr.bf16.mxu0 %v547_v2  ;;  %v530_v19 = vadd.f32 %v529_v15, %v3569_v36  ;;  %v531_v22 = vpop.f32.mrb[14].mxu1  ;;  %752 = vmatprep.subr.bf16.mxu1 %v549_v6 }
 0x206   : > { %v542_v18 = vmax.f32 %v477_v7, 0.0  ;;  %v481_v23 = vpop.f32.mrb[15].mxu0  ;;  %700 = vmatpush1.bf16.msra.mxu0 %v546_v62  ;;  %v544_v24 = vmax.f32 %v528_v13, 0.0  ;;  %v532_v26 = vpop.f32.mrb[15].mxu1  ;;  %753 = vmatpush1.bf16.msra.mxu1 %v548_v1 }
 0x207   : > { %v543_v25 = vmax.f32 %v479_v14, 0.0  ;;  %v545_v31 = vmax.f32 %v530_v19, 0.0  ;;  %v3623_v2 = vpop.permute.xlu1 %817  ;;  %v3625_v8 = vpop.permute.xlu0 %822 }
 0x208   : > { %v550_v30 = vpack.c.bf16 %v542_v18, %v542_v18  ;;  %v552_v32 = vpack.c.bf16 %v544_v24, %v544_v24 }
 0x209   : > { %v551_v33 = vpack.c.bf16 %v543_v25, %v543_v25  ;;  %v553_v34 = vpack.c.bf16 %v545_v31, %v545_v31 }
 0x20a   : > { %v688_v38 = vsel %vm259_vm0, %v550_v30, 0  ;;  %v694_v39 = vsel %vm259_vm0, %v552_v32, 0 }
 0x20b   : > { %2965 = vmatprep.subr.msk.bf16.mxu0 %vm259_vm0, %v551_v33  ;;  %2968 = vmatprep.subr.msk.bf16.mxu1 %vm259_vm0, %v553_v34 }
 0x20c   : > { %702 = vmatpush1.bf16.msra.mxu0 %v688_v38  ;;  %755 = vmatpush1.bf16.msra.mxu1 %v694_v39 }
 0x20f   : > { %2966 = vmatmul.mubr.msk.bf16.vlgmr.msra.gmra.mrb[16].mxu0 %vm680_vm3, %v3479_v20  ;;  %2969 = vmatmul.mubr.msk.bf16.vlgmr.msra.gmra.mrb[16].mxu1 %vm680_vm3, %v3479_v20 }
 0x210   : > { %741 = vmatprep.mubr.bf16.mxu0 %v3278_v0  ;;  %794 = vmatprep.mubr.bf16.mxu1 %v3278_v0 }
 0x217   : > { %2967 = vmatmul.mubr.msk.bf16.gmra.mrb[20].mxu0 %vm680_vm3, %v3489_v21  ;;  %2970 = vmatmul.mubr.msk.bf16.gmra.mrb[20].mxu1 %vm680_vm3, %v3489_v21 }
 0x218   : > { %905 = vmatprep.mubr.bf16.mxu0 %v3278_v0  ;;  %946 = vmatprep.mubr.bf16.mxu1 %v3278_v0 }
 0x2e2   : > { %v733_v42 = vpop.f32.mrb[16].mxu0  ;;  %v786_v44 = vpop.f32.mrb[16].mxu1 }
 0x2e3   : > { %v825_v43 = vadd.f32 %v3611_v40, %v733_v42  ;;  %v735_v45 = vpop.f32.mrb[17].mxu0  ;;  %v827_v46 = vadd.f32 %v3611_v40, %v786_v44  ;;  %v788_v48 = vpop.f32.mrb[17].mxu1  ;;  %v966_v44 = vld [vmem:[%s3409_s9 + $0x28] sm:$0xff] }
 0x2e4   : > { %v826_v47 = vadd.f32 %v3611_v40, %v735_v45  ;;  %v737_v49 = vpop.f32.mrb[18].mxu0  ;;  %v828_v50 = vadd.f32 %v3611_v40, %v788_v48  ;;  %v790_v52 = vpop.f32.mrb[18].mxu1  ;;  %v965_v45 = vld [vmem:[%s3409_s9 + $0x20] sm:$0xff] }
 0x2e5   : > { %v829_v51 = vadd.f32 %v3613_v41, %v737_v49  ;;  %v739_v53 = vpop.f32.mrb[19].mxu0  ;;  %v831_v54 = vadd.f32 %v3613_v41, %v790_v52  ;;  %v792_v57 = vpop.f32.mrb[19].mxu1  ;;  %v841_v58 = vmax.f32 %v825_v43, 0.0  ;;  %v843_v61 = vmax.f32 %v827_v46, 0.0 }
 0x2e6   : > { %v830_v56 = vadd.f32 %v3613_v41, %v739_v53  ;;  %v832_v60 = vadd.f32 %v3613_v41, %v792_v57  ;;  %v842_v62 = vmax.f32 %v826_v47, 0.0  ;;  %v844_v3 = vmax.f32 %v828_v50, 0.0  ;;  %v968_v50 = vld [vmem:[%s3409_s9 + $0x38] sm:$0xff] }
 0x2e7   : > { %v845_v59 = vmax.f32 %v829_v51, 0.0  ;;  %v847_v63 = vmax.f32 %v831_v54, 0.0  ;;  %v967_v51 = vld [vmem:[%s3409_s9 + $0x30] sm:$0xff] }
 0x2e8   : > { %v846_v1 = vmax.f32 %v830_v56, 0.0  ;;  %v848_v7 = vmax.f32 %v832_v60, 0.0 }
 0x2e9   : > { %v857_v6 = vpack.c.bf16 %v845_v59, %v841_v58  ;;  %v859_v11 = vpack.c.bf16 %v847_v63, %v843_v61  ;;  %v3639_v58 = vpack.c.bf16 %v966_v44, %v966_v44  ;;  %v969_v59 = vpack.c.bf16 %v965_v45, %v965_v45  ;;  %v3646_v63 = vld [vmem:[%s4141_s1 + $0x2c] sm:$0xf] }
 0x2ea   : > { %v858_v13 = vpack.c.bf16 %v846_v1, %v842_v62  ;;  %v743_v14 = vpop.f32.mrb[20].mxu0  ;;  %v860_v15 = vpack.c.bf16 %v848_v7, %v844_v3  ;;  %v796_v18 = vpop.f32.mrb[20].mxu1  ;;  %v3641_v61 = vpack.c.bf16 %v968_v50, %v968_v50  ;;  %v971_v62 = vpack.c.bf16 %v967_v51, %v967_v51 }
 0x2eb   : > { %v833_v16 = vadd.f32 %v3623_v2, %v743_v14  ;;  %v745_v19 = vpop.f32.mrb[21].mxu0  ;;  %v835_v22 = vadd.f32 %v3623_v2, %v796_v18  ;;  %v798_v24 = vpop.f32.mrb[21].mxu1  ;;  %v3651_v1 = vsel %vm259_vm0, %v969_v59, 0 }
 0x2ec   : > { %v834_v23 = vadd.f32 %v3623_v2, %v745_v19  ;;  %v747_v25 = vpop.f32.mrb[22].mxu0  ;;  %873 = vmatprep.subr.bf16.mxu0 %v858_v13  ;;  %v836_v26 = vadd.f32 %v3623_v2, %v798_v24  ;;  %v800_v31 = vpop.f32.mrb[22].mxu1  ;;  %914 = vmatprep.subr.bf16.mxu1 %v860_v15  ;;  %v3656_v3 = vsel %vm259_vm0, %v971_v62, 0 }
 0x2ed   : > { %v837_v30 = vadd.f32 %v3625_v8, %v747_v25  ;;  %v749_v32 = vpop.f32.mrb[23].mxu0  ;;  %874 = vmatpush1.bf16.msra.mxu0 %v857_v6  ;;  %v839_v33 = vadd.f32 %v3625_v8, %v800_v31  ;;  %v802_v38 = vpop.f32.mrb[23].mxu1  ;;  %915 = vmatpush1.bf16.msra.mxu1 %v859_v11  ;;  %v849_v39 = vmax.f32 %v833_v16, 0.0  ;;  %v851_v46 = vmax.f32 %v835_v22, 0.0 }
 0x2ee   : > { %v838_v34 = vadd.f32 %v3625_v8, %v749_v32  ;;  %v840_v43 = vadd.f32 %v3625_v8, %v802_v38  ;;  %v850_v47 = vmax.f32 %v834_v23, 0.0  ;;  %v852_v52 = vmax.f32 %v836_v26, 0.0  ;;  %v3678_v6 = vpop.permute.xlu1 %867 }
 0x2ef   : > { %v853_v42 = vmax.f32 %v837_v30, 0.0  ;;  %v855_v48 = vmax.f32 %v839_v33, 0.0 }
 0x2f0   : > { %v854_v49 = vmax.f32 %v838_v34, 0.0  ;;  %v856_v54 = vmax.f32 %v840_v43, 0.0 }
 0x2f1   : > { %v861_v53 = vpack.c.bf16 %v853_v42, %v849_v39  ;;  %v863_v56 = vpack.c.bf16 %v855_v48, %v851_v46 }
 0x2f2   : > { %v862_v57 = vpack.c.bf16 %v854_v49, %v850_v47  ;;  %v864_v60 = vpack.c.bf16 %v856_v54, %v852_v52 }
 0x2f4   : > { %875 = vmatprep.subr.bf16.mxu0 %v862_v57  ;;  %916 = vmatprep.subr.bf16.mxu1 %v864_v60 }
 0x2f5   : > { %876 = vmatpush1.bf16.msra.mxu0 %v861_v53  ;;  %917 = vmatpush1.bf16.msra.mxu1 %v863_v56 }
 0x2f6   : > { %2973 = vmatprep.subr.msk.bf16.mxu0 %vm259_vm0, %v3639_v58  ;;  %2976 = vmatprep.subr.msk.bf16.mxu1 %vm259_vm0, %v3641_v61 }
 0x2f8   : > { %2971 = vmatmul.mubr.msk.bf16.vlgmr.msra.gmra.mrb[24].mxu0 %vm425_vm2, %v3646_v63  ;;  %2972 = vmatmul.mubr.msk.bf16.vlgmr.msra.gmra.mrb[24].mxu1 %vm425_vm2, %v3646_v63 }
 0x2f9   : > { %986 = vmatpush1.bf16.msra.mxu0 %v3651_v1  ;;  %1039 = vmatpush1.bf16.msra.mxu1 %v3656_v3 }
 0x2fa   : > { %1017 = vmatprep.mubr.bf16.mxu0 %v3278_v0  ;;  %1070 = vmatprep.mubr.bf16.mxu1 %v3278_v0 }
 0x300   : > { %2974 = vmatmul.mubr.msk.bf16.vlgmr.msra.gmra.mrb[28].mxu0 %vm252_vm1, %v3437_v10  ;;  %2977 = vmatmul.mubr.msk.bf16.vlgmr.msra.gmra.mrb[28].mxu1 %vm252_vm1, %v3437_v10 }
 0x301   : > { %1027 = vmatprep.mubr.bf16.mxu0 %v3278_v0  ;;  %1080 = vmatprep.mubr.bf16.mxu1 %v3278_v0 }
 0x308   : > { %2975 = vmatmul.mubr.msk.bf16.gmra.mrb[32].mxu0 %vm252_vm1, %v3468_v17  ;;  %2978 = vmatmul.mubr.msk.bf16.gmra.mrb[32].mxu1 %vm252_vm1, %v3468_v17 }
 0x309   : > { %1147 = vmatprep.mubr.bf16.mxu0 %v3278_v0  ;;  %1198 = vmatprep.mubr.bf16.mxu1 %v3278_v0 }
 0x3cb   : > { %v907_v7 = vpop.f32.mrb[24].mxu0  ;;  %v948_v11 = vpop.f32.mrb[24].mxu1 }
 0x3cc   : > { %v908_v10 = vadd.f32 %v907_v7, %v3678_v6  ;;  %v909_v13 = vpop.f32.mrb[25].mxu0  ;;  %v949_v14 = vadd.f32 %v948_v11, %v3678_v6  ;;  %v950_v16 = vpop.f32.mrb[25].mxu1 }
 0x3cd   : > { %v910_v15 = vadd.f32 %v909_v13, %v3678_v6  ;;  %v911_v18 = vpop.f32.mrb[26].mxu0  ;;  %v951_v17 = vadd.f32 %v950_v16, %v3678_v6  ;;  %v952_v19 = vpop.f32.mrb[26].mxu1 }
 0x3ce   : > { %v912_v22 = vpop.f32.mrb[27].mxu0  ;;  %v953_v24 = vpop.f32.mrb[27].mxu1 }
 0x3cf   : > { %v959_v23 = vcombine.low %v908_v10, %v910_v15  ;;  %v960_v25 = vcombine.low %v949_v14, %v951_v17 }
 0x3d1   : > { %963 = vst [vmem:[%s3685_s19] sm:$0xff] %v959_v23  ;;  %964 = vst [vmem:[%s3685_s19 + $0x8] sm:$0xff] %v960_v25 }
 0x3d3   : > { %v1019_v26 = vpop.f32.mrb[28].mxu0  ;;  %v1072_v31 = vpop.f32.mrb[28].mxu1 }
 0x3d4   : > { %v1020_v30 = vadd.f32 %v1019_v26, %v3509_v27  ;;  %v1021_v32 = vpop.f32.mrb[29].mxu0  ;;  %v1073_v33 = vadd.f32 %v1072_v31, %v3509_v27  ;;  %v1074_v38 = vpop.f32.mrb[29].mxu1 }
 0x3d5   : > { %v1022_v34 = vadd.f32 %v1021_v32, %v3509_v27  ;;  %v1023_v39 = vpop.f32.mrb[30].mxu0  ;;  %v1075_v42 = vadd.f32 %v1074_v38, %v3509_v27  ;;  %v1076_v44 = vpop.f32.mrb[30].mxu1 }
 0x3d6   : > { %v1024_v43 = vadd.f32 %v1023_v39, %v3513_v29  ;;  %v1025_v45 = vpop.f32.mrb[31].mxu0  ;;  %v1077_v46 = vadd.f32 %v1076_v44, %v3513_v29  ;;  %v1078_v48 = vpop.f32.mrb[31].mxu1  ;;  %v1091_v49 = vmax.f32 %v1020_v30, 0.0  ;;  %v1093_v52 = vmax.f32 %v1073_v33, 0.0 }
 0x3d7   : > { %v1026_v47 = vadd.f32 %v1025_v45, %v3513_v29  ;;  %v1079_v51 = vadd.f32 %v1078_v48, %v3513_v29  ;;  %v1092_v53 = vmax.f32 %v1022_v34, 0.0  ;;  %v1094_v57 = vmax.f32 %v1075_v42, 0.0 }
 0x3d8   : > { %v1095_v50 = vmax.f32 %v1024_v43, 0.0  ;;  %v1097_v54 = vmax.f32 %v1077_v46, 0.0 }
 0x3d9   : > { %v1096_v56 = vmax.f32 %v1026_v47, 0.0  ;;  %v1098_v60 = vmax.f32 %v1079_v51, 0.0 }
 0x3da   : > { %v1107_v59 = vpack.c.bf16 %v1095_v50, %v1091_v49  ;;  %v1109_v62 = vpack.c.bf16 %v1097_v54, %v1093_v52 }
 0x3db   : > { %v1108_v7 = vpack.c.bf16 %v1096_v56, %v1092_v53  ;;  %v1029_v10 = vpop.f32.mrb[32].mxu0  ;;  %v1110_v11 = vpack.c.bf16 %v1098_v60, %v1094_v57  ;;  %v1082_v14 = vpop.f32.mrb[32].mxu1 }
 0x3dc   : > { %v1030_v13 = vadd.f32 %v1029_v10, %v3511_v28  ;;  %v1031_v15 = vpop.f32.mrb[33].mxu0  ;;  %v1083_v16 = vadd.f32 %v1082_v14, %v3511_v28  ;;  %v1084_v17 = vpop.f32.mrb[33].mxu1 }
 0x3dd   : > { %v1032_v18 = vadd.f32 %v1031_v15, %v3511_v28  ;;  %v1033_v19 = vpop.f32.mrb[34].mxu0  ;;  %1115 = vmatprep.subr.bf16.mxu0 %v1108_v7  ;;  %v1085_v22 = vadd.f32 %v1084_v17, %v3511_v28  ;;  %v1086_v24 = vpop.f32.mrb[34].mxu1  ;;  %1166 = vmatprep.subr.bf16.mxu1 %v1110_v11 }
 0x3de   : > { %v1034_v23 = vadd.f32 %v1033_v19, %v3523_v55  ;;  %v1035_v25 = vpop.f32.mrb[35].mxu0  ;;  %1116 = vmatpush1.bf16.msra.mxu0 %v1107_v59  ;;  %v1087_v26 = vadd.f32 %v1086_v24, %v3523_v55  ;;  %v1088_v31 = vpop.f32.mrb[35].mxu1  ;;  %1167 = vmatpush1.bf16.msra.mxu1 %v1109_v62  ;;  %v1099_v32 = vmax.f32 %v1030_v13, 0.0  ;;  %v1101_v38 = vmax.f32 %v1083_v16, 0.0 }
 0x3df   : > { %v1036_v30 = vadd.f32 %v1035_v25, %v3523_v55  ;;  %v1089_v34 = vadd.f32 %v1088_v31, %v3523_v55  ;;  %v1100_v39 = vmax.f32 %v1032_v18, 0.0  ;;  %v1102_v44 = vmax.f32 %v1085_v22, 0.0 }
 0x3e0   : > { %v1103_v33 = vmax.f32 %v1034_v23, 0.0  ;;  %v1105_v42 = vmax.f32 %v1087_v26, 0.0 }
 0x3e1   : > { %v1104_v43 = vmax.f32 %v1036_v30, 0.0  ;;  %v1106_v46 = vmax.f32 %v1089_v34, 0.0 }
 0x3e2   : > { %v1111_v45 = vpack.c.bf16 %v1103_v33, %v1099_v32  ;;  %v1113_v47 = vpack.c.bf16 %v1105_v42, %v1101_v38 }
 0x3e3   : > { %v1112_v48 = vpack.c.bf16 %v1104_v43, %v1100_v39  ;;  %v1114_v49 = vpack.c.bf16 %v1106_v46, %v1102_v44 }
 0x3e5   : > { %1117 = vmatprep.subr.bf16.mxu0 %v1112_v48  ;;  %1168 = vmatprep.subr.bf16.mxu1 %v1114_v49 }
 0x3e6   : > { %1118 = vmatpush1.bf16.msra.mxu0 %v1111_v45  ;;  %1169 = vmatpush1.bf16.msra.mxu1 %v1113_v47 }
 0x3e7   : > { %2983 = vmatprep.subr.msk.bf16.mxu0 %vm259_vm0, %v3639_v58  ;;  %2986 = vmatprep.subr.msk.bf16.mxu1 %vm259_vm0, %v3641_v61 }
 0x3e9   : > { %2979 = vmatmul.mubr.msk.bf16.vlgmr.msra.gmra.mrb[36].mxu0 %vm425_vm2, %v3536_v35  ;;  %2981 = vmatmul.mubr.msk.bf16.vlgmr.msra.gmra.mrb[36].mxu1 %vm425_vm2, %v3536_v35 }
 0x3ea   : > { %1157 = vmatprep.mubr.bf16.mxu0 %v3278_v0  ;;  %1208 = vmatprep.mubr.bf16.mxu1 %v3278_v0 }
 0x3eb   : > { %1238 = vmatpush1.bf16.msra.mxu0 %v3651_v1  ;;  %1291 = vmatpush1.bf16.msra.mxu1 %v3656_v3 }
 0x3f1   : > { %2980 = vmatmul.mubr.msk.bf16.gmra.mrb[40].mxu0 %vm425_vm2, %v3553_v4  ;;  %2982 = vmatmul.mubr.msk.bf16.gmra.mrb[40].mxu1 %vm425_vm2, %v3553_v4 }
 0x3f2   : > { %1269 = vmatprep.mubr.bf16.mxu0 %v3278_v0  ;;  %1322 = vmatprep.mubr.bf16.mxu1 %v3278_v0 }
 0x3f9   : > { %2984 = vmatmul.mubr.msk.bf16.vlgmr.msra.gmra.mrb[44].mxu0 %vm252_vm1, %v3565_v12  ;;  %2987 = vmatmul.mubr.msk.bf16.vlgmr.msra.gmra.mrb[44].mxu1 %vm252_vm1, %v3565_v12 }
 0x3fa   : > { %1279 = vmatprep.mubr.bf16.mxu0 %v3278_v0  ;;  %1332 = vmatprep.mubr.bf16.mxu1 %v3278_v0 }
 0x401   : > { %2985 = vmatmul.mubr.msk.bf16.gmra.mrb[48].mxu0 %vm252_vm1, %v3575_v37  ;;  %2988 = vmatmul.mubr.msk.bf16.gmra.mrb[48].mxu1 %vm252_vm1, %v3575_v37 }
 0x402   : > { %1387 = vmatprep.mubr.bf16.mxu0 %v3278_v0  ;;  %1440 = vmatprep.mubr.bf16.mxu1 %v3278_v0 }
 0x4bc   : > { %v1149_v35 = vpop.f32.mrb[36].mxu0  ;;  %v1200_v58 = vpop.f32.mrb[36].mxu1 }
 0x4bd   : > { %v1150_v4 = vadd.f32 %v1149_v35, %v3563_v9  ;;  %v1151_v61 = vpop.f32.mrb[37].mxu0  ;;  %v1201_v1 = vadd.f32 %v1200_v58, %v3563_v9  ;;  %v1202_v50 = vpop.f32.mrb[37].mxu1 }
 0x4be   : > { %v1152_v3 = vadd.f32 %v1151_v61, %v3563_v9  ;;  %v1153_v51 = vpop.f32.mrb[38].mxu0  ;;  %v1203_v52 = vadd.f32 %v1202_v50, %v3563_v9  ;;  %v1204_v54 = vpop.f32.mrb[38].mxu1 }
 0x4bf   : > { %v1154_v53 = vadd.f32 %v1153_v51, %v3557_v5  ;;  %v1155_v56 = vpop.f32.mrb[39].mxu0  ;;  %v1205_v57 = vadd.f32 %v1204_v54, %v3557_v5  ;;  %v1206_v60 = vpop.f32.mrb[39].mxu1  ;;  %v1217_v62 = vmax.f32 %v1150_v4, 0.0  ;;  %v1219_v11 = vmax.f32 %v1201_v1, 0.0 }
 0x4c0   : > { %v1156_v59 = vadd.f32 %v1155_v56, %v3557_v5  ;;  %v1207_v10 = vadd.f32 %v1206_v60, %v3557_v5  ;;  %v1218_v13 = vmax.f32 %v1152_v3, 0.0  ;;  %v1220_v16 = vmax.f32 %v1203_v52, 0.0 }
 0x4c1   : > { %v1221_v7 = vmax.f32 %v1154_v53, 0.0  ;;  %v1223_v14 = vmax.f32 %v1205_v57, 0.0 }
 0x4c2   : > { %v1222_v15 = vmax.f32 %v1156_v59, 0.0  ;;  %v1224_v17 = vmax.f32 %v1207_v10, 0.0 }
 0x4c3   : > { %v1229_v18 = vpack.c.bf16 %v1221_v7, %v1217_v62  ;;  %v1231_v19 = vpack.c.bf16 %v1223_v14, %v1219_v11 }
 0x4c4   : > { %v1230_v22 = vpack.c.bf16 %v1222_v15, %v1218_v13  ;;  %v1159_v23 = vpop.f32.mrb[40].mxu0  ;;  %v1232_v24 = vpack.c.bf16 %v1224_v17, %v1220_v16  ;;  %v1210_v26 = vpop.f32.mrb[40].mxu1 }
 0x4c5   : > { %v1160_v25 = vadd.f32 %v1159_v23, %v3569_v36  ;;  %v1161_v30 = vpop.f32.mrb[41].mxu0  ;;  %v1211_v31 = vadd.f32 %v1210_v26, %v3569_v36  ;;  %v1212_v33 = vpop.f32.mrb[41].mxu1 }
 0x4c6   : > { %v1162_v32 = vadd.f32 %v1161_v30, %v3569_v36  ;;  %v1163_v34 = vpop.f32.mrb[42].mxu0  ;;  %1355 = vmatprep.subr.bf16.mxu0 %v1230_v22  ;;  %v1213_v39 = vadd.f32 %v1212_v33, %v3569_v36  ;;  %v1214_v42 = vpop.f32.mrb[42].mxu1  ;;  %1408 = vmatprep.subr.bf16.mxu1 %v1232_v24 }
 0x4c7   : > { %v1225_v38 = vmax.f32 %v1160_v25, 0.0  ;;  %v1164_v43 = vpop.f32.mrb[43].mxu0  ;;  %1356 = vmatpush1.bf16.msra.mxu0 %v1229_v18  ;;  %v1227_v44 = vmax.f32 %v1211_v31, 0.0  ;;  %v1215_v46 = vpop.f32.mrb[43].mxu1  ;;  %1409 = vmatpush1.bf16.msra.mxu1 %v1231_v19 }
 0x4c8   : > { %v1226_v45 = vmax.f32 %v1162_v32, 0.0  ;;  %v1228_v48 = vmax.f32 %v1213_v39, 0.0 }
 0x4c9   : > { %v1233_v47 = vpack.c.bf16 %v1225_v38, %v1225_v38  ;;  %v1235_v49 = vpack.c.bf16 %v1227_v44, %v1227_v44 }
 0x4ca   : > { %v1234_v35 = vpack.c.bf16 %v1226_v45, %v1226_v45  ;;  %v1236_v4 = vpack.c.bf16 %v1228_v48, %v1228_v48 }
 0x4cb   : > { %v1344_v58 = vsel %vm259_vm0, %v1233_v47, 0  ;;  %v1350_v61 = vsel %vm259_vm0, %v1235_v49, 0 }
 0x4cc   : > { %2989 = vmatprep.subr.msk.bf16.mxu0 %vm259_vm0, %v1234_v35  ;;  %2992 = vmatprep.subr.msk.bf16.mxu1 %vm259_vm0, %v1236_v4 }
 0x4cd   : > { %1358 = vmatpush1.bf16.msra.mxu0 %v1344_v58  ;;  %1411 = vmatpush1.bf16.msra.mxu1 %v1350_v61  ;;  %v1594_v58 = vld [vmem:[%s3409_s9 + $0x48] sm:$0xff]  ;;  %v1593_v61 = vld [vmem:[%s3409_s9 + $0x40] sm:$0xff] }
 0x4d0   : > { %2990 = vmatmul.mubr.msk.bf16.vlgmr.msra.gmra.mrb[44].mxu0 %vm680_vm3, %v3479_v20  ;;  %2993 = vmatmul.mubr.msk.bf16.vlgmr.msra.gmra.mrb[44].mxu1 %vm680_vm3, %v3479_v20 }
 0x4d1   : > { %1397 = vmatprep.mubr.bf16.mxu0 %v3278_v0  ;;  %1450 = vmatprep.mubr.bf16.mxu1 %v3278_v0 }
 0x4d8   : > { %2991 = vmatmul.mubr.msk.bf16.gmra.mrb[48].mxu0 %vm680_vm3, %v3489_v21  ;;  %2994 = vmatmul.mubr.msk.bf16.gmra.mrb[48].mxu1 %vm680_vm3, %v3489_v21 }
 0x4d9   : > { %1533 = vmatprep.mubr.bf16.mxu0 %v3278_v0  ;;  %1574 = vmatprep.mubr.bf16.mxu1 %v3278_v0 }
 0x5a3   : > { %v1389_v1 = vpop.f32.mrb[44].mxu0  ;;  %v1442_v50 = vpop.f32.mrb[44].mxu1 }
 0x5a4   : > { %v1461_v3 = vadd.f32 %v1389_v1, %v3611_v40  ;;  %v1391_v51 = vpop.f32.mrb[45].mxu0  ;;  %v1463_v20 = vadd.f32 %v1442_v50, %v3611_v40  ;;  %v1444_v53 = vpop.f32.mrb[45].mxu1 }
 0x5a5   : > { %v1462_v52 = vadd.f32 %v1391_v51, %v3611_v40  ;;  %v1393_v54 = vpop.f32.mrb[46].mxu0  ;;  %v1464_v56 = vadd.f32 %v1444_v53, %v3611_v40  ;;  %v1446_v21 = vpop.f32.mrb[46].mxu1 }
 0x5a6   : > { %v1465_v57 = vadd.f32 %v1393_v54, %v3613_v41  ;;  %v1395_v59 = vpop.f32.mrb[47].mxu0  ;;  %v1467_v60 = vadd.f32 %v1446_v21, %v3613_v41  ;;  %v1448_v7 = vpop.f32.mrb[47].mxu1  ;;  %v1477_v10 = vmax.f32 %v1461_v3, 0.0  ;;  %v1479_v14 = vmax.f32 %v1463_v20, 0.0  ;;  %v1596_v20 = vld [vmem:[%s3409_s9 + $0x58] sm:$0xff] }
 0x5a7   : > { %v1466_v62 = vadd.f32 %v1395_v59, %v3613_v41  ;;  %v1468_v13 = vadd.f32 %v1448_v7, %v3613_v41  ;;  %v1478_v15 = vmax.f32 %v1462_v52, 0.0  ;;  %v1480_v17 = vmax.f32 %v1464_v56, 0.0  ;;  %v1595_v52 = vld [vmem:[%s3409_s9 + $0x50] sm:$0xff] }
 0x5a8   : > { %v1481_v11 = vmax.f32 %v1465_v57, 0.0  ;;  %v1483_v16 = vmax.f32 %v1467_v60, 0.0  ;;  %v3783_v59 = vpack.c.bf16 %v1594_v58, %v1594_v58  ;;  %v1597_v60 = vpack.c.bf16 %v1593_v61, %v1593_v61 }
 0x5a9   : > { %v1482_v18 = vmax.f32 %v1466_v62, 0.0  ;;  %v1484_v22 = vmax.f32 %v1468_v13, 0.0  ;;  %v3785_v7 = vpack.c.bf16 %v1596_v20, %v1596_v20 }
 0x5aa   : > { %v1493_v19 = vpack.c.bf16 %v1481_v11, %v1477_v10  ;;  %v1495_v23 = vpack.c.bf16 %v1483_v16, %v1479_v14  ;;  %v1599_v10 = vpack.c.bf16 %v1595_v52, %v1595_v52  ;;  %v3790_v11 = vsel %vm259_vm0, %v1597_v60, 0  ;;  %v3808_v14 = vld [vmem:[%s4141_s1] sm:$0xff]  }
 0x5ab   : > { %v1494_v24 = vpack.c.bf16 %v1482_v18, %v1478_v15  ;;  %v1399_v25 = vpop.f32.mrb[48].mxu0  ;;  %v1496_v26 = vpack.c.bf16 %v1484_v22, %v1480_v17  ;;  %v1452_v31 = vpop.f32.mrb[48].mxu1 }
 0x5ac   : > { %v1469_v30 = vadd.f32 %v1399_v25, %v3623_v2  ;;  %v1401_v32 = vpop.f32.mrb[49].mxu0  ;;  %v1471_v33 = vadd.f32 %v1452_v31, %v3623_v2  ;;  %v1454_v38 = vpop.f32.mrb[49].mxu1  ;;  %v3795_v13 = vsel %vm259_vm0, %v1599_v10, 0 }
 0x5ad   : > { %v1470_v34 = vadd.f32 %v1401_v32, %v3623_v2  ;;  %v1403_v39 = vpop.f32.mrb[50].mxu0  ;;  %1501 = vmatprep.subr.bf16.mxu0 %v1494_v24  ;;  %v1472_v42 = vadd.f32 %v1454_v38, %v3623_v2  ;;  %v1456_v44 = vpop.f32.mrb[50].mxu1  ;;  %1542 = vmatprep.subr.bf16.mxu1 %v1496_v26 }
 0x5ae   : > { %v1473_v43 = vadd.f32 %v1403_v39, %v3625_v8  ;;  %v1405_v45 = vpop.f32.mrb[51].mxu0  ;;  %1502 = vmatpush1.bf16.msra.mxu0 %v1493_v19  ;;  %v1475_v46 = vadd.f32 %v1456_v44, %v3625_v8  ;;  %v1458_v48 = vpop.f32.mrb[51].mxu1  ;;  %1543 = vmatpush1.bf16.msra.mxu1 %v1495_v23  ;;  %v1485_v49 = vmax.f32 %v1469_v30, 0.0  ;;  %v1487_v1 = vmax.f32 %v1471_v33, 0.0 }
 0x5af   : > { %v1474_v47 = vadd.f32 %v1405_v45, %v3625_v8  ;;  %v1476_v4 = vadd.f32 %v1458_v48, %v3625_v8  ;;  %v1486_v3 = vmax.f32 %v1470_v34, 0.0  ;;  %v1488_v53 = vmax.f32 %v1472_v42, 0.0 }
 0x5b0   : > { %v1489_v35 = vmax.f32 %v1473_v43, 0.0  ;;  %v1491_v50 = vmax.f32 %v1475_v46, 0.0 }
 0x5b1   : > { %v1490_v51 = vmax.f32 %v1474_v47, 0.0  ;;  %v1492_v56 = vmax.f32 %v1476_v4, 0.0 }
 0x5b2   : > { %v1497_v54 = vpack.c.bf16 %v1489_v35, %v1485_v49  ;;  %v1499_v57 = vpack.c.bf16 %v1491_v50, %v1487_v1 }
 0x5b3   : > { %v1498_v21 = vpack.c.bf16 %v1490_v51, %v1486_v3  ;;  %v1500_v62 = vpack.c.bf16 %v1492_v56, %v1488_v53 }
 0x5b5   : > { %1503 = vmatprep.subr.bf16.mxu0 %v1498_v21  ;;  %1544 = vmatprep.subr.bf16.mxu1 %v1500_v62 }
 0x5b6   : > { %1504 = vmatpush1.bf16.msra.mxu0 %v1497_v54  ;;  %1545 = vmatpush1.bf16.msra.mxu1 %v1499_v57 }
 0x5b7   : > { %2997 = vmatprep.subr.msk.bf16.mxu0 %vm259_vm0, %v3783_v59  ;;  %3000 = vmatprep.subr.msk.bf16.mxu1 %vm259_vm0, %v3785_v7 }
 0x5b9   : > { %2995 = vmatmul.mubr.msk.bf16.vlgmr.msra.gmra.mrb[52].mxu0 %vm425_vm2, %v3646_v63  ;;  %2996 = vmatmul.mubr.msk.bf16.vlgmr.msra.gmra.mrb[52].mxu1 %vm425_vm2, %v3646_v63  ;;  %v3819_v63 = vld [vmem:[%s4141_s1 + $0x8] sm:$0xff]  }
 0x5ba   : > { %1614 = vmatpush1.bf16.msra.mxu0 %v3790_v11  ;;  %1667 = vmatpush1.bf16.msra.mxu1 %v3795_v13 }
 0x5bb   : > { %1645 = vmatprep.mubr.bf16.mxu0 %v3278_v0  ;;  %1698 = vmatprep.mubr.bf16.mxu1 %v3278_v0 }
 0x5c1   : > { %2998 = vmatmul.mubr.msk.bf16.vlgmr.msra.gmra.mrb[56].mxu0 %vm252_vm1, %v3808_v14  ;;  %3001 = vmatmul.mubr.msk.bf16.vlgmr.msra.gmra.mrb[56].mxu1 %vm252_vm1, %v3808_v14 }
 0x5c2   : > { %1655 = vmatprep.mubr.bf16.mxu0 %v3278_v0  ;;  %1708 = vmatprep.mubr.bf16.mxu1 %v3278_v0 }
 0x5c9   : > { %2999 = vmatmul.mubr.msk.bf16.gmra.mrb[60].mxu0 %vm252_vm1, %v3819_v63  ;;  %3002 = vmatmul.mubr.msk.bf16.gmra.mrb[60].mxu1 %vm252_vm1, %v3819_v63 }
 0x5ca   : > { %1775 = vmatprep.mubr.bf16.mxu0 %v3278_v0  ;;  %1826 = vmatprep.mubr.bf16.mxu1 %v3278_v0 }
 0x68c   : > { %v1535_v15 = vpop.f32.mrb[52].mxu0  ;;  %v1576_v18 = vpop.f32.mrb[52].mxu1 }
 0x68d   : > { %v1536_v16 = vadd.f32 %v1535_v15, %v3678_v6  ;;  %v1537_v17 = vpop.f32.mrb[53].mxu0  ;;  %v1577_v19 = vadd.f32 %v1576_v18, %v3678_v6  ;;  %v1578_v23 = vpop.f32.mrb[53].mxu1 }
 0x68e   : > { %v1538_v22 = vadd.f32 %v1537_v17, %v3678_v6  ;;  %v1539_v24 = vpop.f32.mrb[54].mxu0  ;;  %v1579_v25 = vadd.f32 %v1578_v23, %v3678_v6  ;;  %v1580_v26 = vpop.f32.mrb[54].mxu1 }
 0x68f   : > { %v1540_v30 = vpop.f32.mrb[55].mxu0  ;;  %v1581_v32 = vpop.f32.mrb[55].mxu1 }
 0x690   : > { %v1587_v31 = vcombine.low %v1536_v16, %v1538_v22  ;;  %v1588_v33 = vcombine.low %v1577_v19, %v1579_v25 }
 0x692   : > { %1591 = vst [vmem:[%s3685_s19 + $0x10] sm:$0xff] %v1587_v31  ;;  %1592 = vst [vmem:[%s3685_s19 + $0x18] sm:$0xff] %v1588_v33 }
 0x694   : > { %v1647_v34 = vpop.f32.mrb[56].mxu0  ;;  %v1700_v39 = vpop.f32.mrb[56].mxu1 }
 0x695   : > { %v1648_v38 = vadd.f32 %v1647_v34, %v3509_v27  ;;  %v1649_v42 = vpop.f32.mrb[57].mxu0  ;;  %v1701_v43 = vadd.f32 %v1700_v39, %v3509_v27  ;;  %v1702_v45 = vpop.f32.mrb[57].mxu1 }
 0x696   : > { %v1650_v44 = vadd.f32 %v1649_v42, %v3509_v27  ;;  %v1651_v46 = vpop.f32.mrb[58].mxu0  ;;  %v1703_v47 = vadd.f32 %v1702_v45, %v3509_v27  ;;  %v1704_v49 = vpop.f32.mrb[58].mxu1 }
 0x697   : > { %v1652_v48 = vadd.f32 %v1651_v46, %v3513_v29  ;;  %v1653_v35 = vpop.f32.mrb[59].mxu0  ;;  %v1705_v4 = vadd.f32 %v1704_v49, %v3513_v29  ;;  %v1706_v61 = vpop.f32.mrb[59].mxu1  ;;  %v1719_v1 = vmax.f32 %v1648_v38, 0.0  ;;  %v1721_v51 = vmax.f32 %v1701_v43, 0.0 }
 0x698   : > { %v1654_v58 = vadd.f32 %v1653_v35, %v3513_v29  ;;  %v1707_v50 = vadd.f32 %v1706_v61, %v3513_v29  ;;  %v1720_v20 = vmax.f32 %v1650_v44, 0.0  ;;  %v1722_v54 = vmax.f32 %v1703_v47, 0.0 }
 0x699   : > { %v1723_v3 = vmax.f32 %v1652_v48, 0.0  ;;  %v1725_v52 = vmax.f32 %v1705_v4, 0.0 }
 0x69a   : > { %v1724_v53 = vmax.f32 %v1654_v58, 0.0  ;;  %v1726_v57 = vmax.f32 %v1707_v50, 0.0  ;;  %v3856_v58 = vld [vmem:[%s4141_s1 + $0x10] sm:$0xff]  }
 0x69b   : > { %v1735_v56 = vpack.c.bf16 %v1723_v3, %v1719_v1  ;;  %v1737_v21 = vpack.c.bf16 %v1725_v52, %v1721_v51 }
 0x69c   : > { %v1736_v60 = vpack.c.bf16 %v1724_v53, %v1720_v20  ;;  %v1657_v62 = vpop.f32.mrb[60].mxu0  ;;  %v1738_v10 = vpack.c.bf16 %v1726_v57, %v1722_v54  ;;  %v1710_v16 = vpop.f32.mrb[60].mxu1 }
 0x69d   : > { %v1658_v15 = vadd.f32 %v1657_v62, %v3511_v28  ;;  %v1659_v18 = vpop.f32.mrb[61].mxu0  ;;  %v1711_v17 = vadd.f32 %v1710_v16, %v3511_v28  ;;  %v1712_v22 = vpop.f32.mrb[61].mxu1 }
 0x69e   : > { %v1660_v19 = vadd.f32 %v1659_v18, %v3511_v28  ;;  %v1661_v23 = vpop.f32.mrb[62].mxu0  ;;  %1743 = vmatprep.subr.bf16.mxu0 %v1736_v60  ;;  %v1713_v24 = vadd.f32 %v1712_v22, %v3511_v28  ;;  %v1714_v26 = vpop.f32.mrb[62].mxu1  ;;  %1794 = vmatprep.subr.bf16.mxu1 %v1738_v10 }
 0x69f   : > { %v1662_v25 = vadd.f32 %v1661_v23, %v3523_v55  ;;  %v1663_v30 = vpop.f32.mrb[63].mxu0  ;;  %1744 = vmatpush1.bf16.msra.mxu0 %v1735_v56  ;;  %v1715_v31 = vadd.f32 %v1714_v26, %v3523_v55  ;;  %v1716_v33 = vpop.f32.mrb[63].mxu1  ;;  %1795 = vmatpush1.bf16.msra.mxu1 %v1737_v21  ;;  %v1727_v34 = vmax.f32 %v1658_v15, 0.0  ;;  %v1729_v42 = vmax.f32 %v1711_v17, 0.0 }
 0x6a0   : > { %v1664_v32 = vadd.f32 %v1663_v30, %v3523_v55  ;;  %v1717_v39 = vadd.f32 %v1716_v33, %v3523_v55  ;;  %v1728_v43 = vmax.f32 %v1660_v19, 0.0  ;;  %v1730_v46 = vmax.f32 %v1713_v24, 0.0 }
 0x6a1   : > { %v1731_v38 = vmax.f32 %v1662_v25, 0.0  ;;  %v1733_v44 = vmax.f32 %v1715_v31, 0.0 }
 0x6a2   : > { %v1732_v45 = vmax.f32 %v1664_v32, 0.0  ;;  %v1734_v48 = vmax.f32 %v1717_v39, 0.0 }
 0x6a3   : > { %v1739_v47 = vpack.c.bf16 %v1731_v38, %v1727_v34  ;;  %v1741_v49 = vpack.c.bf16 %v1733_v44, %v1729_v42 }
 0x6a4   : > { %v1740_v35 = vpack.c.bf16 %v1732_v45, %v1728_v43  ;;  %v1742_v4 = vpack.c.bf16 %v1734_v48, %v1730_v46 }
 0x6a6   : > { %1745 = vmatprep.subr.bf16.mxu0 %v1740_v35  ;;  %1796 = vmatprep.subr.bf16.mxu1 %v1742_v4 }
 0x6a7   : > { %1746 = vmatpush1.bf16.msra.mxu0 %v1739_v47  ;;  %1797 = vmatpush1.bf16.msra.mxu1 %v1741_v49 }
 0x6a8   : > { %3007 = vmatprep.subr.msk.bf16.mxu0 %vm259_vm0, %v3783_v59  ;;  %3010 = vmatprep.subr.msk.bf16.mxu1 %vm259_vm0, %v3785_v7  ;;  %v3869_v59 = vld [vmem:[%s4141_s1 + $0x18] ss:$0 sps:$4 sm:$0xff]  }
 0x6aa   : > { %3003 = vmatmul.mubr.msk.bf16.vlgmr.msra.gmra.mrb[64].mxu0 %vm425_vm2, %v3856_v58  ;;  %3005 = vmatmul.mubr.msk.bf16.vlgmr.msra.gmra.mrb[64].mxu1 %vm425_vm2, %v3856_v58 }
 0x6ab   : > { %1785 = vmatprep.mubr.bf16.mxu0 %v3278_v0  ;;  %1836 = vmatprep.mubr.bf16.mxu1 %v3278_v0 }
 0x6ac   : > { %1866 = vmatpush1.bf16.msra.mxu0 %v3790_v11  ;;  %1919 = vmatpush1.bf16.msra.mxu1 %v3795_v13 }
 0x6b2   : > { %3004 = vmatmul.mubr.msk.bf16.gmra.mrb[68].mxu0 %vm425_vm2, %v3869_v59  ;;  %3006 = vmatmul.mubr.msk.bf16.gmra.mrb[68].mxu1 %vm425_vm2, %v3869_v59 }
 0x6b3   : > { %1897 = vmatprep.mubr.bf16.mxu0 %v3278_v0  ;;  %1950 = vmatprep.mubr.bf16.mxu1 %v3278_v0 }
 0x6ba   : > { %3008 = vmatmul.mubr.msk.bf16.vlgmr.msra.gmra.mrb[72].mxu0 %vm252_vm1, %v3565_v12  ;;  %3011 = vmatmul.mubr.msk.bf16.vlgmr.msra.gmra.mrb[72].mxu1 %vm252_vm1, %v3565_v12 }
 0x6bb   : > { %1907 = vmatprep.mubr.bf16.mxu0 %v3278_v0  ;;  %1960 = vmatprep.mubr.bf16.mxu1 %v3278_v0 }
 0x6c2   : > { %3009 = vmatmul.mubr.msk.bf16.gmra.mrb[76].mxu0 %vm252_vm1, %v3575_v37  ;;  %3012 = vmatmul.mubr.msk.bf16.gmra.mrb[76].mxu1 %vm252_vm1, %v3575_v37 }
 0x6c3   : > { %2015 = vmatprep.mubr.bf16.mxu0 %v3278_v0  ;;  %2068 = vmatprep.mubr.bf16.mxu1 %v3278_v0 }
 0x77d   : > { %v1777_v7 = vpop.f32.mrb[64].mxu0  ;;  %v1828_v13 = vpop.f32.mrb[64].mxu1 }
 0x77e   : > { %v1778_v11 = vadd.f32 %v1777_v7, %v3563_v9  ;;  %v1779_v61 = vpop.f32.mrb[65].mxu0  ;;  %v1829_v1 = vadd.f32 %v1828_v13, %v3563_v9  ;;  %v1830_v50 = vpop.f32.mrb[65].mxu1 }
 0x77f   : > { %v1780_v3 = vadd.f32 %v1779_v61, %v3563_v9  ;;  %v1781_v51 = vpop.f32.mrb[66].mxu0  ;;  %v1831_v20 = vadd.f32 %v1830_v50, %v3563_v9  ;;  %v1832_v53 = vpop.f32.mrb[66].mxu1  ;;  %v3919_v50 = vld [vmem:[%s4141_s1 + $0x24] sm:$0xff]  }
 0x780   : > { %v1782_v52 = vadd.f32 %v1781_v51, %v3557_v5  ;;  %v1783_v54 = vpop.f32.mrb[67].mxu0  ;;  %v1833_v56 = vadd.f32 %v1832_v53, %v3557_v5  ;;  %v1834_v21 = vpop.f32.mrb[67].mxu1  ;;  %v1845_v60 = vmax.f32 %v1778_v11, 0.0  ;;  %v1847_v15 = vmax.f32 %v1829_v1, 0.0 }
 0x781   : > { %v1784_v57 = vadd.f32 %v1783_v54, %v3557_v5  ;;  %v1835_v10 = vadd.f32 %v1834_v21, %v3557_v5  ;;  %v1846_v16 = vmax.f32 %v1780_v3, 0.0  ;;  %v1848_v19 = vmax.f32 %v1831_v20, 0.0  ;;  %v3908_v3 = vld [vmem:[%s4141_s1 + $0x1c] sm:$0xff]  }
 0x782   : > { %v1849_v62 = vmax.f32 %v1782_v52, 0.0  ;;  %v1851_v18 = vmax.f32 %v1833_v56, 0.0 }
 0x783   : > { %v1850_v17 = vmax.f32 %v1784_v57, 0.0  ;;  %v1852_v23 = vmax.f32 %v1835_v10, 0.0 }
 0x784   : > { %v1857_v22 = vpack.c.bf16 %v1849_v62, %v1845_v60  ;;  %v1859_v24 = vpack.c.bf16 %v1851_v18, %v1847_v15 }
 0x785   : > { %v1858_v25 = vpack.c.bf16 %v1850_v17, %v1846_v16  ;;  %v1787_v26 = vpop.f32.mrb[68].mxu0  ;;  %v1860_v30 = vpack.c.bf16 %v1852_v23, %v1848_v19  ;;  %v1838_v32 = vpop.f32.mrb[68].mxu1 }
 0x786   : > { %v1788_v31 = vadd.f32 %v1787_v26, %v3569_v36  ;;  %v1789_v33 = vpop.f32.mrb[69].mxu0  ;;  %v1839_v34 = vadd.f32 %v1838_v32, %v3569_v36  ;;  %v1840_v39 = vpop.f32.mrb[69].mxu1 }
 0x787   : > { %v1790_v38 = vadd.f32 %v1789_v33, %v3569_v36  ;;  %v1791_v42 = vpop.f32.mrb[70].mxu0  ;;  %1983 = vmatprep.subr.bf16.mxu0 %v1858_v25  ;;  %v1841_v44 = vadd.f32 %v1840_v39, %v3569_v36  ;;  %v1842_v45 = vpop.f32.mrb[70].mxu1  ;;  %2036 = vmatprep.subr.bf16.mxu1 %v1860_v30 }
 0x788   : > { %v1853_v43 = vmax.f32 %v1788_v31, 0.0  ;;  %v1792_v46 = vpop.f32.mrb[71].mxu0  ;;  %1984 = vmatpush1.bf16.msra.mxu0 %v1857_v22  ;;  %v1855_v47 = vmax.f32 %v1839_v34, 0.0  ;;  %v1843_v49 = vpop.f32.mrb[71].mxu1  ;;  %2037 = vmatpush1.bf16.msra.mxu1 %v1859_v24 }
 0x789   : > { %v1854_v48 = vmax.f32 %v1790_v38, 0.0  ;;  %v1856_v4 = vmax.f32 %v1841_v44, 0.0 }
 0x78a   : > { %v1861_v35 = vpack.c.bf16 %v1853_v43, %v1853_v43  ;;  %v1863_v7 = vpack.c.bf16 %v1855_v47, %v1855_v47 }
 0x78b   : > { %v1862_v11 = vpack.c.bf16 %v1854_v48, %v1854_v48  ;;  %v1864_v13 = vpack.c.bf16 %v1856_v4, %v1856_v4 }
 0x78c   : > { %v1972_v61 = vsel %vm259_vm0, %v1861_v35, 0  ;;  %v1978_v1 = vsel %vm259_vm0, %v1863_v7, 0 }
 0x78d   : > { %3013 = vmatprep.subr.msk.bf16.mxu0 %vm259_vm0, %v1862_v11  ;;  %3016 = vmatprep.subr.msk.bf16.mxu1 %vm259_vm0, %v1864_v13 }
 0x78e   : > { %1986 = vmatpush1.bf16.msra.mxu0 %v1972_v61  ;;  %2039 = vmatpush1.bf16.msra.mxu1 %v1978_v1 }
 0x791   : > { %3014 = vmatmul.mubr.msk.bf16.vlgmr.msra.gmra.mrb[72].mxu0 %vm680_vm3, %v3908_v3  ;;  %3017 = vmatmul.mubr.msk.bf16.vlgmr.msra.gmra.mrb[72].mxu1 %vm680_vm3, %v3908_v3 }
 0x792   : > { %2025 = vmatprep.mubr.bf16.mxu0 %v3278_v0  ;;  %2078 = vmatprep.mubr.bf16.mxu1 %v3278_v0 }
 0x799   : > { %3015 = vmatmul.mubr.msk.bf16.gmra.mrb[76].mxu0 %vm680_vm3, %v3919_v50  ;;  %3018 = vmatmul.mubr.msk.bf16.gmra.mrb[76].mxu1 %vm680_vm3, %v3919_v50 }
 0x79a   : > { %2161 = vmatprep.mubr.bf16.mxu0 %v3278_v0  ;;  %2202 = vmatprep.mubr.bf16.mxu1 %v3278_v0 }
 0x864   : > { %v2017_v51 = vpop.f32.mrb[72].mxu0  ;;  %v2070_v52 = vpop.f32.mrb[72].mxu1 }
 0x865   : > { %v2089_v20 = vadd.f32 %v2017_v51, %v3611_v40  ;;  %v2019_v53 = vpop.f32.mrb[73].mxu0  ;;  %v2091_v54 = vadd.f32 %v2070_v52, %v3611_v40  ;;  %v2072_v57 = vpop.f32.mrb[73].mxu1 }
 0x866   : > { %v2090_v56 = vadd.f32 %v2019_v53, %v3611_v40  ;;  %v2021_v21 = vpop.f32.mrb[74].mxu0  ;;  %v2092_v60 = vadd.f32 %v2072_v57, %v3611_v40  ;;  %v2074_v10 = vpop.f32.mrb[74].mxu1  ;;  %v2222_v53 = vld [vmem:[%s3409_s9 + $0x68] sm:$0xff] }
 0x867   : > { %v2093_v62 = vadd.f32 %v2021_v21, %v3613_v41  ;;  %v2023_v15 = vpop.f32.mrb[75].mxu0  ;;  %v2095_v16 = vadd.f32 %v2074_v10, %v3613_v41  ;;  %v2076_v17 = vpop.f32.mrb[75].mxu1  ;;  %v2105_v19 = vmax.f32 %v2089_v20, 0.0  ;;  %v2107_v24 = vmax.f32 %v2091_v54, 0.0  ;;  %v2221_v54 = vld [vmem:[%s3409_s9 + $0x60] sm:$0xff]  ;;  %v2223_v10 = vld [vmem:[%s3409_s9 + $0x70] sm:$0xff] }
 0x868   : > { %v2094_v18 = vadd.f32 %v2023_v15, %v3613_v41  ;;  %v2096_v23 = vadd.f32 %v2076_v17, %v3613_v41  ;;  %v2106_v25 = vmax.f32 %v2090_v56, 0.0  ;;  %v2108_v31 = vmax.f32 %v2092_v60, 0.0 }
 0x869   : > { %v2109_v22 = vmax.f32 %v2093_v62, 0.0  ;;  %v2111_v26 = vmax.f32 %v2095_v16, 0.0  ;;  %v2224_v62 = vld [vmem:[%s3409_s9 + $0x78] sm:$0xff] }
 0x86a   : > { %v2110_v30 = vmax.f32 %v2094_v18, 0.0  ;;  %v2112_v33 = vmax.f32 %v2096_v23, 0.0  ;;  %v2225_v23 = vpack.c.bf16 %v2221_v54, %v2221_v54 }
 0x86b   : > { %v2121_v32 = vpack.c.bf16 %v2109_v22, %v2105_v19  ;;  %v2123_v34 = vpack.c.bf16 %v2111_v26, %v2107_v24  ;;  %v3947_v22 = vpack.c.bf16 %v2222_v53, %v2222_v53  ;;  %v2227_v26 = vpack.c.bf16 %v2223_v10, %v2223_v10 }
 0x86c   : > { %v2122_v38 = vpack.c.bf16 %v2110_v30, %v2106_v25  ;;  %v2027_v39 = vpop.f32.mrb[76].mxu0  ;;  %v2124_v42 = vpack.c.bf16 %v2112_v33, %v2108_v31  ;;  %v2080_v44 = vpop.f32.mrb[76].mxu1  ;;  %v3949_v25 = vpack.c.bf16 %v2224_v62, %v2224_v62  ;;  %v3954_v30 = vsel %vm259_vm0, %v2225_v23, 0 }
 0x86d   : > { %v2097_v43 = vadd.f32 %v2027_v39, %v3623_v2  ;;  %v2029_v45 = vpop.f32.mrb[77].mxu0  ;;  %v2099_v46 = vadd.f32 %v2080_v44, %v3623_v2  ;;  %v2082_v48 = vpop.f32.mrb[77].mxu1  ;;  %v3959_v31 = vsel %vm259_vm0, %v2227_v26, 0 }
 0x86e   : > { %v2098_v47 = vadd.f32 %v2029_v45, %v3623_v2  ;;  %v2031_v49 = vpop.f32.mrb[78].mxu0  ;;  %2129 = vmatprep.subr.bf16.mxu0 %v2122_v38  ;;  %v2100_v35 = vadd.f32 %v2082_v48, %v3623_v2  ;;  %v2084_v7 = vpop.f32.mrb[78].mxu1  ;;  %2170 = vmatprep.subr.bf16.mxu1 %v2124_v42 }
 0x86f   : > { %v2101_v4 = vadd.f32 %v2031_v49, %v3625_v8  ;;  %v2033_v11 = vpop.f32.mrb[79].mxu0  ;;  %2130 = vmatpush1.bf16.msra.mxu0 %v2121_v32  ;;  %v2103_v13 = vadd.f32 %v2084_v7, %v3625_v8  ;;  %v2086_v1 = vpop.f32.mrb[79].mxu1  ;;  %2171 = vmatpush1.bf16.msra.mxu1 %v2123_v34  ;;  %v2113_v51 = vmax.f32 %v2097_v43, 0.0  ;;  %v2115_v56 = vmax.f32 %v2099_v46, 0.0  ;;  %v3964_v32 = vld [vmem:[%s4141_s1 + $0x2c] sm:$0xf] }
 0x870   : > { %v2102_v61 = vadd.f32 %v2033_v11, %v3625_v8  ;;  %v2104_v52 = vadd.f32 %v2086_v1, %v3625_v8  ;;  %v2114_v57 = vmax.f32 %v2098_v47, 0.0  ;;  %v2116_v15 = vmax.f32 %v2100_v35, 0.0 }
 0x871   : > { %v2117_v20 = vmax.f32 %v2101_v4, 0.0  ;;  %v2119_v21 = vmax.f32 %v2103_v13, 0.0 }
 0x872   : > { %v2118_v60 = vmax.f32 %v2102_v61, 0.0  ;;  %v2120_v18 = vmax.f32 %v2104_v52, 0.0 }
 0x873   : > { %v2125_v16 = vpack.c.bf16 %v2117_v20, %v2113_v51  ;;  %v2127_v17 = vpack.c.bf16 %v2119_v21, %v2115_v56 }
 0x874   : > { %v2126_v19 = vpack.c.bf16 %v2118_v60, %v2114_v57  ;;  %v2128_v24 = vpack.c.bf16 %v2120_v18, %v2116_v15 }
 0x876   : > { %2131 = vmatprep.subr.bf16.mxu0 %v2126_v19  ;;  %2172 = vmatprep.subr.bf16.mxu1 %v2128_v24 }
 0x877   : > { %2132 = vmatpush1.bf16.msra.mxu0 %v2125_v16  ;;  %2173 = vmatpush1.bf16.msra.mxu1 %v2127_v17 }
 0x878   : > { %3021 = vmatprep.subr.msk.bf16.mxu0 %vm259_vm0, %v3947_v22  ;;  %3024 = vmatprep.subr.msk.bf16.mxu1 %vm259_vm0, %v3949_v25 }
 0x87a   : > { %3019 = vmatmul.mubr.msk.bf16.vlgmr.msra.gmra.mrb[80].mxu0 %vm425_vm2, %v3964_v32  ;;  %3020 = vmatmul.mubr.msk.bf16.vlgmr.msra.gmra.mrb[80].mxu1 %vm425_vm2, %v3964_v32 }
 0x87b   : > { %2242 = vmatpush1.bf16.msra.mxu0 %v3954_v30  ;;  %2295 = vmatpush1.bf16.msra.mxu1 %v3959_v31 }
 0x87c   : > { %2273 = vmatprep.mubr.bf16.mxu0 %v3278_v0  ;;  %2326 = vmatprep.mubr.bf16.mxu1 %v3278_v0 }
 0x882   : > { %3022 = vmatmul.mubr.msk.bf16.vlgmr.msra.gmra.mrb[84].mxu0 %vm252_vm1, %v3808_v14  ;;  %3025 = vmatmul.mubr.msk.bf16.vlgmr.msra.gmra.mrb[84].mxu1 %vm252_vm1, %v3808_v14 }
 0x883   : > { %2283 = vmatprep.mubr.bf16.mxu0 %v3278_v0  ;;  %2336 = vmatprep.mubr.bf16.mxu1 %v3278_v0 }
 0x88a   : > { %3023 = vmatmul.mubr.msk.bf16.gmra.mrb[88].mxu0 %vm252_vm1, %v3819_v63  ;;  %3026 = vmatmul.mubr.msk.bf16.gmra.mrb[88].mxu1 %vm252_vm1, %v3819_v63 }
 0x88b   : > { %2403 = vmatprep.mubr.bf16.mxu0 %v3278_v0  ;;  %2454 = vmatprep.mubr.bf16.mxu1 %v3278_v0 }
 0x94d   : > { %v2163_v33 = vpop.f32.mrb[80].mxu0  ;;  %v2204_v14 = vpop.f32.mrb[80].mxu1 }
 0x94e   : > { %v2164_v34 = vadd.f32 %v2163_v33, %v3678_v6  ;;  %v2165_v38 = vpop.f32.mrb[81].mxu0  ;;  %v2205_v39 = vadd.f32 %v2204_v14, %v3678_v6  ;;  %v2206_v43 = vpop.f32.mrb[81].mxu1 }
 0x94f   : > { %v2166_v42 = vadd.f32 %v2165_v38, %v3678_v6  ;;  %v2167_v44 = vpop.f32.mrb[82].mxu0  ;;  %v2207_v45 = vadd.f32 %v2206_v43, %v3678_v6  ;;  %v2208_v63 = vpop.f32.mrb[82].mxu1 }
 0x950   : > { %v2168_v46 = vpop.f32.mrb[83].mxu0  ;;  %v2209_v48 = vpop.f32.mrb[83].mxu1 }
 0x951   : > { %v2215_v47 = vcombine.low %v2164_v34, %v2166_v42  ;;  %v2216_v49 = vcombine.low %v2205_v39, %v2207_v45 }
 0x953   : > { %2219 = vst [vmem:[%s3685_s19 + $0x20] sm:$0xff] %v2215_v47  ;;  %2220 = vst [vmem:[%s3685_s19 + $0x28] sm:$0xff] %v2216_v49 }
 0x955   : > { %v2275_v35 = vpop.f32.mrb[84].mxu0  ;;  %v2328_v7 = vpop.f32.mrb[84].mxu1 }
 0x956   : > { %v2276_v4 = vadd.f32 %v2275_v35, %v3509_v27  ;;  %v2277_v11 = vpop.f32.mrb[85].mxu0  ;;  %v2329_v13 = vadd.f32 %v2328_v7, %v3509_v27  ;;  %v2330_v1 = vpop.f32.mrb[85].mxu1 }
 0x957   : > { %v2278_v61 = vadd.f32 %v2277_v11, %v3509_v27  ;;  %v2279_v51 = vpop.f32.mrb[86].mxu0  ;;  %v2331_v20 = vadd.f32 %v2330_v1, %v3509_v27  ;;  %v2332_v53 = vpop.f32.mrb[86].mxu1 }
 0x958   : > { %v2280_v52 = vadd.f32 %v2279_v51, %v3513_v29  ;;  %v2281_v54 = vpop.f32.mrb[87].mxu0  ;;  %v2333_v56 = vadd.f32 %v2332_v53, %v3513_v29  ;;  %v2334_v21 = vpop.f32.mrb[87].mxu1  ;;  %v2347_v60 = vmax.f32 %v2276_v4, 0.0  ;;  %v2349_v15 = vmax.f32 %v2329_v13, 0.0 }
 0x959   : > { %v2282_v57 = vadd.f32 %v2281_v54, %v3513_v29  ;;  %v2335_v10 = vadd.f32 %v2334_v21, %v3513_v29  ;;  %v2348_v16 = vmax.f32 %v2278_v61, 0.0  ;;  %v2350_v19 = vmax.f32 %v2331_v20, 0.0 }
 0x95a   : > { %v2351_v62 = vmax.f32 %v2280_v52, 0.0  ;;  %v2353_v18 = vmax.f32 %v2333_v56, 0.0 }
 0x95b   : > { %v2352_v17 = vmax.f32 %v2282_v57, 0.0  ;;  %v2354_v27 = vmax.f32 %v2335_v10, 0.0 }
 0x95c   : > { %v2363_v23 = vpack.c.bf16 %v2351_v62, %v2347_v60  ;;  %v2365_v24 = vpack.c.bf16 %v2353_v18, %v2349_v15 }
 0x95d   : > { %v2364_v26 = vpack.c.bf16 %v2352_v17, %v2348_v16  ;;  %v2285_v33 = vpop.f32.mrb[88].mxu0  ;;  %v2366_v34 = vpack.c.bf16 %v2354_v27, %v2350_v19  ;;  %v2338_v38 = vpop.f32.mrb[88].mxu1 }
 0x95e   : > { %v2286_v14 = vadd.f32 %v2285_v33, %v3511_v28  ;;  %v2287_v39 = vpop.f32.mrb[89].mxu0  ;;  %v2339_v42 = vadd.f32 %v2338_v38, %v3511_v28  ;;  %v2340_v29 = vpop.f32.mrb[89].mxu1 }
 0x95f   : > { %v2288_v43 = vadd.f32 %v2287_v39, %v3511_v28  ;;  %v2289_v44 = vpop.f32.mrb[90].mxu0  ;;  %2371 = vmatprep.subr.bf16.mxu0 %v2364_v26  ;;  %v2341_v45 = vadd.f32 %v2340_v29, %v3511_v28  ;;  %v2342_v46 = vpop.f32.mrb[90].mxu1  ;;  %2422 = vmatprep.subr.bf16.mxu1 %v2366_v34 }
 0x960   : > { %v2290_v63 = vadd.f32 %v2289_v44, %v3523_v55  ;;  %v2291_v47 = vpop.f32.mrb[91].mxu0  ;;  %2372 = vmatpush1.bf16.msra.mxu0 %v2363_v23  ;;  %v2343_v48 = vadd.f32 %v2342_v46, %v3523_v55  ;;  %v2344_v35 = vpop.f32.mrb[91].mxu1  ;;  %2423 = vmatpush1.bf16.msra.mxu1 %v2365_v24  ;;  %v2355_v4 = vmax.f32 %v2286_v14, 0.0  ;;  %v2357_v13 = vmax.f32 %v2339_v42, 0.0 }
 0x961   : > { %v2292_v49 = vadd.f32 %v2291_v47, %v3523_v55  ;;  %v2345_v11 = vadd.f32 %v2344_v35, %v3523_v55  ;;  %v2356_v61 = vmax.f32 %v2288_v43, 0.0  ;;  %v2358_v51 = vmax.f32 %v2341_v45, 0.0 }
 0x962   : > { %v2359_v7 = vmax.f32 %v2290_v63, 0.0  ;;  %v2361_v1 = vmax.f32 %v2343_v48, 0.0 }
 0x963   : > { %v2360_v28 = vmax.f32 %v2292_v49, 0.0  ;;  %v2362_v52 = vmax.f32 %v2345_v11, 0.0 }
 0x964   : > { %v2367_v20 = vpack.c.bf16 %v2359_v7, %v2355_v4  ;;  %v2369_v53 = vpack.c.bf16 %v2361_v1, %v2357_v13 }
 0x965   : > { %v2368_v54 = vpack.c.bf16 %v2360_v28, %v2356_v61  ;;  %v2370_v56 = vpack.c.bf16 %v2362_v52, %v2358_v51 }
 0x967   : > { %2373 = vmatprep.subr.bf16.mxu0 %v2368_v54  ;;  %2424 = vmatprep.subr.bf16.mxu1 %v2370_v56 }
 0x968   : > { %2374 = vmatpush1.bf16.msra.mxu0 %v2367_v20  ;;  %2425 = vmatpush1.bf16.msra.mxu1 %v2369_v53 }
 0x969   : > { %3031 = vmatprep.subr.msk.bf16.mxu0 %vm259_vm0, %v3947_v22  ;;  %3034 = vmatprep.subr.msk.bf16.mxu1 %vm259_vm0, %v3949_v25 }
 0x96b   : > { %3027 = vmatmul.mubr.msk.bf16.vlgmr.msra.gmra.mrb[92].mxu0 %vm425_vm2, %v3856_v58  ;;  %3029 = vmatmul.mubr.msk.bf16.vlgmr.msra.gmra.mrb[92].mxu1 %vm425_vm2, %v3856_v58 }
 0x96c   : > { %2413 = vmatprep.mubr.bf16.mxu0 %v3278_v0  ;;  %2464 = vmatprep.mubr.bf16.mxu1 %v3278_v0 }
 0x96d   : > { %2494 = vmatpush1.bf16.msra.mxu0 %v3954_v30  ;;  %2547 = vmatpush1.bf16.msra.mxu1 %v3959_v31 }
 0x973   : > { %3028 = vmatmul.mubr.msk.bf16.gmra.mrb[96].mxu0 %vm425_vm2, %v3869_v59  ;;  %3030 = vmatmul.mubr.msk.bf16.gmra.mrb[96].mxu1 %vm425_vm2, %v3869_v59 }
 0x974   : > { %2525 = vmatprep.mubr.bf16.mxu0 %v3278_v0  ;;  %2578 = vmatprep.mubr.bf16.mxu1 %v3278_v0 }
 0x97b   : > { %3032 = vmatmul.mubr.msk.bf16.vlgmr.msra.gmra.mrb[100].mxu0 %vm252_vm1, %v3565_v12  ;;  %3035 = vmatmul.mubr.msk.bf16.vlgmr.msra.gmra.mrb[100].mxu1 %vm252_vm1, %v3565_v12 }
 0x97c   : > { %2535 = vmatprep.mubr.bf16.mxu0 %v3278_v0  ;;  %2588 = vmatprep.mubr.bf16.mxu1 %v3278_v0 }
 0x983   : > { %3033 = vmatmul.mubr.msk.bf16.gmra.mrb[104].mxu0 %vm252_vm1, %v3575_v37  ;;  %3036 = vmatmul.mubr.msk.bf16.gmra.mrb[104].mxu1 %vm252_vm1, %v3575_v37 }
 0x984   : > { %2643 = vmatprep.mubr.bf16.mxu0 %v3278_v0  ;;  %2696 = vmatprep.mubr.bf16.mxu1 %v3278_v0 }
 0xa3e   : > { %v2405_v55 = vpop.f32.mrb[92].mxu0  ;;  %v2456_v59 = vpop.f32.mrb[92].mxu1 }
 0xa3f   : > { %v2406_v58 = vadd.f32 %v2405_v55, %v3563_v9  ;;  %v2407_v22 = vpop.f32.mrb[93].mxu0  ;;  %v2457_v12 = vadd.f32 %v2456_v59, %v3563_v9  ;;  %v2458_v30 = vpop.f32.mrb[93].mxu1 }
 0xa40   : > { %v2408_v25 = vadd.f32 %v2407_v22, %v3563_v9  ;;  %v2409_v31 = vpop.f32.mrb[94].mxu0  ;;  %v2459_v57 = vadd.f32 %v2458_v30, %v3563_v9  ;;  %v2460_v37 = vpop.f32.mrb[94].mxu1 }
 0xa41   : > { %v2410_v21 = vadd.f32 %v2409_v31, %v3557_v5  ;;  %v2411_v60 = vpop.f32.mrb[95].mxu0  ;;  %v2461_v62 = vadd.f32 %v2460_v37, %v3557_v5  ;;  %v2462_v15 = vpop.f32.mrb[95].mxu1  ;;  %v2473_v16 = vmax.f32 %v2406_v58, 0.0  ;;  %v2475_v19 = vmax.f32 %v2457_v12, 0.0 }
 0xa42   : > { %v2412_v10 = vadd.f32 %v2411_v60, %v3557_v5  ;;  %v2463_v17 = vadd.f32 %v2462_v15, %v3557_v5  ;;  %v2474_v23 = vmax.f32 %v2408_v25, 0.0  ;;  %v2476_v26 = vmax.f32 %v2459_v57, 0.0 }
 0xa43   : > { %v2477_v18 = vmax.f32 %v2410_v21, 0.0  ;;  %v2479_v27 = vmax.f32 %v2461_v62, 0.0 }
 0xa44   : > { %v2478_v24 = vmax.f32 %v2412_v10, 0.0  ;;  %v2480_v9 = vmax.f32 %v2463_v17, 0.0 }
 0xa45   : > { %v2485_v33 = vpack.c.bf16 %v2477_v18, %v2473_v16  ;;  %v2487_v34 = vpack.c.bf16 %v2479_v27, %v2475_v19 }
 0xa46   : > { %v2486_v14 = vpack.c.bf16 %v2478_v24, %v2474_v23  ;;  %v2415_v38 = vpop.f32.mrb[96].mxu0  ;;  %v2488_v39 = vpack.c.bf16 %v2480_v9, %v2476_v26  ;;  %v2466_v43 = vpop.f32.mrb[96].mxu1 }
 0xa47   : > { %v2416_v42 = vadd.f32 %v2415_v38, %v3569_v36  ;;  %v2417_v29 = vpop.f32.mrb[97].mxu0  ;;  %v2467_v44 = vadd.f32 %v2466_v43, %v3569_v36  ;;  %v2468_v5 = vpop.f32.mrb[97].mxu1 }
 0xa48   : > { %v2418_v45 = vadd.f32 %v2417_v29, %v3569_v36  ;;  %v2419_v63 = vpop.f32.mrb[98].mxu0  ;;  %2611 = vmatprep.subr.bf16.mxu0 %v2486_v14  ;;  %v2469_v47 = vadd.f32 %v2468_v5, %v3569_v36  ;;  %v2470_v48 = vpop.f32.mrb[98].mxu1  ;;  %2664 = vmatprep.subr.bf16.mxu1 %v2488_v39 }
 0xa49   : > { %v2481_v46 = vmax.f32 %v2416_v42, 0.0  ;;  %v2420_v49 = vpop.f32.mrb[99].mxu0  ;;  %2612 = vmatpush1.bf16.msra.mxu0 %v2485_v33  ;;  %v2483_v35 = vmax.f32 %v2467_v44, 0.0  ;;  %v2471_v7 = vpop.f32.mrb[99].mxu1  ;;  %2665 = vmatpush1.bf16.msra.mxu1 %v2487_v34 }
 0xa4a   : > { %v2482_v4 = vmax.f32 %v2418_v45, 0.0  ;;  %v2484_v13 = vmax.f32 %v2469_v47, 0.0 }
 0xa4b   : > { %v2489_v11 = vpack.c.bf16 %v2481_v46, %v2481_v46  ;;  %v2491_v61 = vpack.c.bf16 %v2483_v35, %v2483_v35 }
 0xa4c   : > { %v2490_v1 = vpack.c.bf16 %v2482_v4, %v2482_v4  ;;  %v2492_v28 = vpack.c.bf16 %v2484_v13, %v2484_v13 }
 0xa4d   : > { %v2600_v51 = vsel %vm259_vm0, %v2489_v11, 0  ;;  %v2606_v20 = vsel %vm259_vm0, %v2491_v61, 0 }
 0xa4e   : > { %3037 = vmatprep.subr.msk.bf16.mxu0 %vm259_vm0, %v2490_v1  ;;  %3040 = vmatprep.subr.msk.bf16.mxu1 %vm259_vm0, %v2492_v28 }
 0xa4f   : > { %2614 = vmatpush1.bf16.msra.mxu0 %v2600_v51  ;;  %2667 = vmatpush1.bf16.msra.mxu1 %v2606_v20 }
 0xa52   : > { %3038 = vmatmul.mubr.msk.bf16.vlgmr.msra.gmra.mrb[100].mxu0 %vm680_vm3, %v3908_v3  ;;  %3041 = vmatmul.mubr.msk.bf16.vlgmr.msra.gmra.mrb[100].mxu1 %vm680_vm3, %v3908_v3 }
 0xa53   : > { %2653 = vmatprep.mubr.bf16.mxu0 %v3278_v0  ;;  %2706 = vmatprep.mubr.bf16.mxu1 %v3278_v0 }
 0xa5a   : > { %3039 = vmatmul.mubr.msk.bf16.gmra.mrb[104].mxu0 %vm680_vm3, %v3919_v50  ;;  %3042 = vmatmul.mubr.msk.bf16.gmra.mrb[104].mxu1 %vm680_vm3, %v3919_v50 }
 0xa5b   : > { %2789 = vmatprep.mubr.bf16.mxu0 %v3278_v0  ;;  %2830 = vmatprep.mubr.bf16.mxu1 %v3278_v0 }
 0xb25   : > { %v2645_v36 = vpop.f32.mrb[100].mxu0  ;;  %v2698_v53 = vpop.f32.mrb[100].mxu1 }
 0xb26   : > { %v2717_v52 = vadd.f32 %v2645_v36, %v3611_v40  ;;  %v2647_v54 = vpop.f32.mrb[101].mxu0  ;;  %v2719_v3 = vadd.f32 %v2698_v53, %v3611_v40  ;;  %v2700_v55 = vpop.f32.mrb[101].mxu1 }
 0xb27   : > { %v2718_v56 = vadd.f32 %v2647_v54, %v3611_v40  ;;  %v2649_v58 = vpop.f32.mrb[102].mxu0  ;;  %v2720_v59 = vadd.f32 %v2700_v55, %v3611_v40  ;;  %v2702_v50 = vpop.f32.mrb[102].mxu1 }
 0xb28   : > { %v2721_v22 = vadd.f32 %v2649_v58, %v3613_v41  ;;  %v2651_v12 = vpop.f32.mrb[103].mxu0  ;;  %v2723_v25 = vadd.f32 %v2702_v50, %v3613_v41  ;;  %v2704_v30 = vpop.f32.mrb[103].mxu1  ;;  %v2733_v31 = vmax.f32 %v2717_v52, 0.0  ;;  %v2735_v37 = vmax.f32 %v2719_v3, 0.0 }
 0xb29   : > { %v2722_v0 = vadd.f32 %v2651_v12, %v3613_v41  ;;  %v2724_v21 = vadd.f32 %v2704_v30, %v3613_v41  ;;  %v2734_v60 = vmax.f32 %v2718_v56, 0.0  ;;  %v2736_v15 = vmax.f32 %v2720_v59, 0.0 }
 0xb2a   : > { %v2737_v57 = vmax.f32 %v2721_v22, 0.0  ;;  %v2739_v62 = vmax.f32 %v2723_v25, 0.0 }
 0xb2b   : > { %v2738_v10 = vmax.f32 %v2722_v0, 0.0  ;;  %v2740_v40 = vmax.f32 %v2724_v21, 0.0 }
 0xb2c   : > { %v2749_v16 = vpack.c.bf16 %v2737_v57, %v2733_v31  ;;  %v2751_v18 = vpack.c.bf16 %v2739_v62, %v2735_v37 }
 0xb2d   : > { %v2750_v17 = vpack.c.bf16 %v2738_v10, %v2734_v60  ;;  %v2655_v19 = vpop.f32.mrb[104].mxu0  ;;  %v2752_v23 = vpack.c.bf16 %v2740_v40, %v2736_v15  ;;  %v2708_v24 = vpop.f32.mrb[104].mxu1 }
 0xb2e   : > { %v2725_v27 = vadd.f32 %v2655_v19, %v3623_v2  ;;  %v2657_v26 = vpop.f32.mrb[105].mxu0  ;;  %v2727_v33 = vadd.f32 %v2708_v24, %v3623_v2  ;;  %v2710_v41 = vpop.f32.mrb[105].mxu1 }
 0xb2f   : > { %v2726_v9 = vadd.f32 %v2657_v26, %v3623_v2  ;;  %v2659_v34 = vpop.f32.mrb[106].mxu0  ;;  %2757 = vmatprep.subr.bf16.mxu0 %v2750_v17  ;;  %v2728_v14 = vadd.f32 %v2710_v41, %v3623_v2  ;;  %v2712_v39 = vpop.f32.mrb[106].mxu1  ;;  %2798 = vmatprep.subr.bf16.mxu1 %v2752_v23 }
 0xb30   : > { %v2729_v38 = vadd.f32 %v2659_v34, %v3625_v8  ;;  %v2661_v42 = vpop.f32.mrb[107].mxu0  ;;  %2758 = vmatpush1.bf16.msra.mxu0 %v2749_v16  ;;  %v2731_v43 = vadd.f32 %v2712_v39, %v3625_v8  ;;  %v2714_v44 = vpop.f32.mrb[107].mxu1  ;;  %2799 = vmatpush1.bf16.msra.mxu1 %v2751_v18  ;;  %v2741_v45 = vmax.f32 %v2725_v27, 0.0  ;;  %v2743_v46 = vmax.f32 %v2727_v33, 0.0 }
 0xb31   : > { %v2730_v29 = vadd.f32 %v2661_v42, %v3625_v8  ;;  %v2732_v63 = vadd.f32 %v2714_v44, %v3625_v8  ;;  %v2742_v47 = vmax.f32 %v2726_v9, 0.0  ;;  %v2744_v49 = vmax.f32 %v2728_v14, 0.0 }
 0xb32   : > { %v2745_v5 = vmax.f32 %v2729_v38, 0.0  ;;  %v2747_v48 = vmax.f32 %v2731_v43, 0.0 }
 0xb33   : > { %v2746_v2 = vmax.f32 %v2730_v29, 0.0  ;;  %v2748_v4 = vmax.f32 %v2732_v63, 0.0 }
 0xb34   : > { %v2753_v35 = vpack.c.bf16 %v2745_v5, %v2741_v45  ;;  %v2755_v7 = vpack.c.bf16 %v2747_v48, %v2743_v46 }
 0xb35   : > { %v2754_v11 = vpack.c.bf16 %v2746_v2, %v2742_v47  ;;  %v2756_v13 = vpack.c.bf16 %v2748_v4, %v2744_v49 }
 0xb37   : > { %2759 = vmatprep.subr.bf16.mxu0 %v2754_v11  ;;  %2800 = vmatprep.subr.bf16.mxu1 %v2756_v13 }
 0xb38   : > { %2760 = vmatpush1.bf16.msra.mxu0 %v2753_v35  ;;  %2801 = vmatpush1.bf16.msra.mxu1 %v2755_v7 }
 0xb3b   : > { %3043 = vmatmul.mubr.msk.bf16.vlgmr.msra.gmra.mrb[108].mxu0 %vm425_vm2, %v3964_v32  ;;  %3044 = vmatmul.mubr.msk.bf16.vlgmr.msra.gmra.mrb[108].mxu1 %vm425_vm2, %v3964_v32 }
 0xc0e   : > { %v2791_v8 = vpop.f32.mrb[108].mxu0  ;;  %v2832_v1 = vpop.f32.mrb[108].mxu1 }
 0xc0f   : > { %v2792_v61 = vadd.f32 %v2791_v8, %v3678_v6  ;;  %v2793_v28 = vpop.f32.mrb[109].mxu0  ;;  %v2833_v51 = vadd.f32 %v2832_v1, %v3678_v6  ;;  %v2834_v36 = vpop.f32.mrb[109].mxu1 }
 0xc10   : > { %v2794_v20 = vadd.f32 %v2793_v28, %v3678_v6  ;;  %v2795_v52 = vpop.f32.mrb[110].mxu0  ;;  %v2835_v53 = vadd.f32 %v2834_v36, %v3678_v6  ;;  %v2836_v32 = vpop.f32.mrb[110].mxu1 }
 0xc11   : > { %v2796_v54 = vpop.f32.mrb[111].mxu0  ;;  %v2837_v56 = vpop.f32.mrb[111].mxu1 }
 0xc12   : > { %v2843_v3 = vcombine.low %v2792_v61, %v2794_v20  ;;  %v2844_v55 = vcombine.low %v2833_v51, %v2835_v53 }
 0xc14   : > { %2847 = vst [vmem:[%s3685_s19 + $0x30] sm:$0xff] %v2843_v3  ;;  %2848 = vst [vmem:[%s3685_s19 + $0x38] sm:$0xff] %v2844_v55 }
 0xc15   : > { %3222 = shalt.err (!%p3219_p3)
}
 0xc16   : > { %s3223_s29 = scalar_lea.hbm %s4095_s26, 1024  ;;  %s3227_s4 = scalar_lea.hbm %s4143_s3, 4096 }
 0xc17   : > { %p3224_p5 = scmp.ne.s32.totalorder %s4095_s26, %s3223_s29  ;;  %p3228_p13 = scmp.lt.u32.totalorder %s4095_s26, %s4143_s3 }
 0xc18   : > { %p3229_p0 = scmp.lt.u32.totalorder %s3227_s4, %s3223_s29  ;;  %p3231_p6 = scmp.lt.u32.totalorder %s3223_s29, %s4095_s26 }
 0xc19   : > { %p3225_p7 = pnand %p3224_p5, %p4152_p10 }
 0xc1a   : > { %p3230_p2 = por %p3229_p0, %p3228_p13 }
 0xc1b   : > { %p3226_p8 = pneg %p3225_p7 }
 0xc1c   : > { %p3232_p11 = por %p3231_p6, %p3230_p2 }
 0xc1e   : > { %p3233_p12 = pnand %p3232_p11, %p3226_p8 }
 0xc20   : > { %3236 = shalt.err (!%p3233_p12)
}
 0xc21   : > { %3118 = dma.vmem_to_hbm [thread:$0]  (%p4152_p10), %s4097_s17, 1024, %s4095_s26, %s2850_s16  }
 0xc22 PF: > { %p3129_p4 = scmp.ge.s32.totalorder %s3275_s15, 2  ;;  %s2876_s8 = sand.u32 1, %s3263_s12  }
 0xc23   : > { %p4153_p9 = scmp.ne.s32.totalorder %s4148_s25, 0  ;;  %s2877_s9 = scalar_lea.sflag [#allocation4], %s2876_s8 }
 0xc25   : > { %p3125_p1 = pnand %p3129_p4, %p4153_p9 }
 0xc27   : > { %3258 = dma.done.wait (!%p3125_p1), %s2877_s9, 1024  }
 0xc28   : > { %3260 = vsyncadd (!%p3125_p1), %s2877_s9, 4294966272  ;;  %p16_p3 = scmp.ge.s32.totalorder %s3326_s18, 6   ;;  %s4154_s12 = smov %s3267_s13 }
 0xc29   : > { %s4155_s13 = smov %s3271_s14  ;;  %s4156_s14 = smov %s3338_s21 }
 0xc2a   : > { %s4157_s15 = smov %s3326_s18  ;;  %18 = sbr.rel (!%p16_p3) target bundleno = 5 (0x5), region = 77 }
 0xc31   :  { %2882 = vsyncpa [#allocation3], 1 }
 0xc32   :  { %2884 = vsyncpa [#allocation3 + $0x1], 1 }
 0xc33   :  { %2885 = vsyncpa [#allocation4], 1 }
 0xc34   :  { %2887 = vsyncpa [#allocation4 + $0x1], 1 }

</bundles_post_ra>
